<compile_context>
chip_gen: v7x
topology: tpu7x:2x2x1
jax: 0.10.0
libtpu: 0.0.40
codegen_flags: <defaults>
</compile_context>

<pallas_src>
import jax
import jax.numpy as jnp
from jax.experimental import pallas as pl
from jax.experimental.pallas import tpu as pltpu


def _controller_nn_head_kernel(feats_ref, w1_ref, w2_ref, wsm_ref, b_ref, out_ref):
    # AdaptiveAvgPool2d((1,1)) == global spatial mean.  The 1/(H*W) scale is
    # folded into w1 by pack_params, so a plain f32 sublane sum suffices.
    # feats_ref layout: (Bp, H*W, 1024) with lanes 0:512 = input1 channels and
    # lanes 512:1024 = input2 channels (the torch.cat along dim=1).
    pooled = jnp.sum(feats_ref[...], axis=1)            # (Bp, 1024) f32
    x = pooled.astype(jnp.bfloat16)

    # Bias block (8, 512) f32: one (zero-padded) row per layer.
    b1 = b_ref[0:1, :]                                   # (1, 512)
    b2 = b_ref[1:2, 0:256]
    b3 = b_ref[2:3, 0:128]
    b4 = b_ref[3:4, 0:128]
    b5 = b_ref[4:5, 0:128]
    bo = b_ref[5:6, 0:128]

    # Small-weight block (640, 128) bf16, all layers zero-padded to 128 lanes.
    w3 = wsm_ref[0:256, :]                               # linear3: 256 -> 128
    w4 = wsm_ref[256:384, :]                             # linear4: 128 -> 64 (padded)
    w5 = wsm_ref[384:512, :]                             # linear5:  64 -> 32 (padded)
    wo = wsm_ref[512:640, :]                             # linear  :  32 -> 14 (padded)

    i1 = jnp.maximum(
        jnp.dot(x, w1_ref[...], preferred_element_type=jnp.float32) + b1, 0.0)
    i2 = jnp.maximum(
        jnp.dot(i1.astype(jnp.bfloat16), w2_ref[...],
                preferred_element_type=jnp.float32) + b2, 0.0)
    i3 = jnp.maximum(
        jnp.dot(i2.astype(jnp.bfloat16), w3,
                preferred_element_type=jnp.float32) + b3, 0.0)
    i4 = jnp.maximum(
        jnp.dot(i3.astype(jnp.bfloat16), w4,
                preferred_element_type=jnp.float32) + b4, 0.0)
    # linear5 and the final linear have no ReLU; padded lanes stay exactly 0
    # because the corresponding weight columns / bias lanes are 0.
    h_t = jnp.dot(i4.astype(jnp.bfloat16), w5,
                  preferred_element_type=jnp.float32) + b5
    out = jnp.dot(h_t.astype(jnp.bfloat16), wo,
                  preferred_element_type=jnp.float32) + bo   # (Bp, 128), lanes 14: == 0

    out_ref[...] = out


def controller_nn_head(f1, f2, packed):
    """f1, f2: (B, 512, H, W) layer4 feature maps (NCHW). Returns (B, 14)."""
    B, C, Hs, Ws = f1.shape
    hw = Hs * Ws
    # NCHW -> (B, H*W, C), then put the two branches side by side on the lane
    # axis so the in-kernel torch.cat((i_1, i_2), 1) is free.
    f1r = jnp.transpose(f1.reshape(B, C, hw), (0, 2, 1))
    f2r = jnp.transpose(f2.reshape(B, C, hw), (0, 2, 1))
    feats = jnp.concatenate([f1r, f2r], axis=-1).astype(jnp.float32)  # (B, hw, 2C)

    bp = max(8, ((B + 7) // 8) * 8)            # pad batch to the f32 sublane tile
    if bp != B:
        feats = jnp.pad(feats, ((0, bp - B), (0, 0), (0, 0)))

    vmem = pl.BlockSpec(memory_space=pltpu.MemorySpace.VMEM)
    # Note: a single ungridded call runs on one TensorCore; a parallel batch
    # grid axis would be needed to use both v7x cores (not worthwhile at B=2).
    out = pl.pallas_call(
        _controller_nn_head_kernel,
        out_shape=jax.ShapeDtypeStruct((bp, 128), jnp.float32),
        in_specs=[vmem] * 5,
        out_specs=vmem,
    )(feats, packed["w1"], packed["w2"], packed["w_small"], packed["biases"])
    return out[:B, :14]


def init_params(key):
    """Deterministic synthetic parameters matching the module's layer shapes.

    Weights are stored (in, out); a real nn.Linear checkpoint must be
    transposed when loaded into this layout.
    """
    ks = jax.random.split(key, 12)
    s = 0.05

    def rn(k, shape):
        return s * jax.random.normal(k, shape, jnp.float32)

    return {
        "w1": rn(ks[0], (1024, 512)), "b1": rn(ks[1], (512,)),   # linear1
        "w2": rn(ks[2], (512, 256)),  "b2": rn(ks[3], (256,)),   # linear2
        "w3": rn(ks[4], (256, 128)),  "b3": rn(ks[5], (128,)),   # linear3
        "w4": rn(ks[6], (128, 64)),   "b4": rn(ks[7], (64,)),    # linear4
        "w5": rn(ks[8], (64, 32)),    "b5": rn(ks[9], (32,)),    # linear5
        "wo": rn(ks[10], (32, 14)),   "bo": rn(ks[11], (14,)),   # linear (out)
    }


def pack_params(params, hw):
    """One-time pack into kernel-ready arrays (done outside the call path)."""
    f32, bf16 = jnp.float32, jnp.bfloat16

    # Fold the AdaptiveAvgPool2d 1/(H*W) scale into linear1 (linear op).
    w1 = (params["w1"].astype(f32) * (1.0 / hw)).astype(bf16)        # (1024, 512)
    w2 = params["w2"].astype(bf16)                                   # (512, 256)

    def pad2(w, rows, cols):
        r, c = w.shape
        return jnp.pad(w.astype(f32), ((0, rows - r), (0, cols - c)))

    w_small = jnp.concatenate([
        pad2(params["w3"], 256, 128),     # rows   0:256
        pad2(params["w4"], 128, 128),     # rows 256:384
        pad2(params["w5"], 128, 128),     # rows 384:512
        pad2(params["wo"], 128, 128),     # rows 512:640
    ], axis=0).astype(bf16)                                          # (640, 128)

    def bias_row(b):
        return jnp.pad(b.astype(f32), (0, 512 - b.shape[0]))

    biases = jnp.stack([
        bias_row(params["b1"]), bias_row(params["b2"]), bias_row(params["b3"]),
        bias_row(params["b4"]), bias_row(params["b5"]), bias_row(params["bo"]),
        jnp.zeros((512,), f32), jnp.zeros((512,), f32),
    ], axis=0)                                                       # (8, 512)

    return {"w1": w1, "w2": w2, "w_small": w_small, "biases": biases}


def _reference(f1, f2, packed):
    """Pure-JAX reference mirroring the kernel's dtype/padding choices."""
    B, C, Hs, Ws = f1.shape
    hw = Hs * Ws
    f1r = jnp.transpose(f1.reshape(B, C, hw), (0, 2, 1))
    f2r = jnp.transpose(f2.reshape(B, C, hw), (0, 2, 1))
    feats = jnp.concatenate([f1r, f2r], axis=-1).astype(jnp.float32)
    x = jnp.sum(feats, axis=1)
    w1, w2, wsm, b = (packed["w1"], packed["w2"],
                      packed["w_small"], packed["biases"])

    def lin(x, w, bias, relu=True):
        y = jnp.dot(x.astype(jnp.bfloat16), w,
                    preferred_element_type=jnp.float32) + bias
        return jnp.maximum(y, 0.0) if relu else y

    i1 = lin(x, w1, b[0:1, :])
    i2 = lin(i1, w2, b[1:2, :256])
    i3 = lin(i2, wsm[0:256], b[2:3, :128])
    i4 = lin(i3, wsm[256:384], b[3:4, :128])
    h = lin(i4, wsm[384:512], b[4:5, :128], relu=False)
    o = lin(h, wsm[512:640], b[5:6, :128], relu=False)
    return o[:, :14]


if __name__ == "__main__":
    B = 2
    key = jax.random.PRNGKey(0)
    kf1, kf2 = jax.random.split(key, 2)
    # resnet18 layer4 output for a 64x64 image: (B, 512, 2, 2)
    f1 = jax.random.normal(kf1, (B, 512, 2, 2), jnp.float32)
    f2 = jax.random.normal(kf2, (B, 512, 2, 2), jnp.float32)

    params = init_params(jax.random.PRNGKey(1))
    packed = pack_params(params, hw=2 * 2)

    out = controller_nn_head(f1, f2, packed)
    jax.block_until_ready(out)
    assert out.shape == (B, 14)

    ref = _reference(f1, f2, packed)
    assert jnp.allclose(out, ref, rtol=1e-2, atol=1e-3), "mismatch vs reference"

    print("KERNEL_OK")
</pallas_src>

<mosaic_0001>
module attributes {stable_mosaic.version = 11 : i64} {
  func.func @_controller_nn_head_kernel(%arg0: memref<8x4x1024xf32, #tpu.memory_space<vmem>>, %arg1: memref<1024x512xbf16, #tpu.memory_space<vmem>>, %arg2: memref<512x256xbf16, #tpu.memory_space<vmem>>, %arg3: memref<640x128xbf16, #tpu.memory_space<vmem>>, %arg4: memref<8x512xf32, #tpu.memory_space<vmem>>, %arg5: memref<8x128xf32, #tpu.memory_space<vmem>>) attributes {dimension_semantics = [], scalar_prefetch = 0 : i64, scratch_operands = 0 : i64, tpu.core_type = #tpu.core_type<tc>} {
    %c0 = arith.constant 0 : index
    %c0_0 = arith.constant 0 : index
    %c0_1 = arith.constant 0 : index
    %0 = vector.load %arg0[%c0, %c0_0, %c0_1] : memref<8x4x1024xf32, #tpu.memory_space<vmem>>, vector<8x4x1024xf32>
    %cst = arith.constant dense<0.000000e+00> : vector<8x1024xf32>
    %1 = vector.multi_reduction <add>, %0, %cst [1] : vector<8x4x1024xf32> to vector<8x1024xf32>
    %2 = arith.truncf %1 : vector<8x1024xf32> to vector<8x1024xbf16>
    %c0_2 = arith.constant 0 : index
    %c0_3 = arith.constant 0 : index
    %3 = vector.load %arg4[%c0_2, %c0_3] : memref<8x512xf32, #tpu.memory_space<vmem>>, vector<1x512xf32>
    %c1 = arith.constant 1 : index
    %c0_4 = arith.constant 0 : index
    %4 = vector.load %arg4[%c1, %c0_4] : memref<8x512xf32, #tpu.memory_space<vmem>>, vector<1x256xf32>
    %c2 = arith.constant 2 : index
    %c0_5 = arith.constant 0 : index
    %5 = vector.load %arg4[%c2, %c0_5] : memref<8x512xf32, #tpu.memory_space<vmem>>, vector<1x128xf32>
    %c3 = arith.constant 3 : index
    %c0_6 = arith.constant 0 : index
    %6 = vector.load %arg4[%c3, %c0_6] : memref<8x512xf32, #tpu.memory_space<vmem>>, vector<1x128xf32>
    %c4 = arith.constant 4 : index
    %c0_7 = arith.constant 0 : index
    %7 = vector.load %arg4[%c4, %c0_7] : memref<8x512xf32, #tpu.memory_space<vmem>>, vector<1x128xf32>
    %c5 = arith.constant 5 : index
    %c0_8 = arith.constant 0 : index
    %8 = vector.load %arg4[%c5, %c0_8] : memref<8x512xf32, #tpu.memory_space<vmem>>, vector<1x128xf32>
    %c0_9 = arith.constant 0 : index
    %c0_10 = arith.constant 0 : index
    %9 = vector.load %arg3[%c0_9, %c0_10] : memref<640x128xbf16, #tpu.memory_space<vmem>>, vector<256x128xbf16>
    %c256 = arith.constant 256 : index
    %c0_11 = arith.constant 0 : index
    %10 = vector.load %arg3[%c256, %c0_11] : memref<640x128xbf16, #tpu.memory_space<vmem>>, vector<128x128xbf16>
    %c384 = arith.constant 384 : index
    %c0_12 = arith.constant 0 : index
    %11 = vector.load %arg3[%c384, %c0_12] : memref<640x128xbf16, #tpu.memory_space<vmem>>, vector<128x128xbf16>
    %c512 = arith.constant 512 : index
    %c0_13 = arith.constant 0 : index
    %12 = vector.load %arg3[%c512, %c0_13] : memref<640x128xbf16, #tpu.memory_space<vmem>>, vector<128x128xbf16>
    %c0_14 = arith.constant 0 : index
    %c0_15 = arith.constant 0 : index
    %13 = vector.load %arg1[%c0_14, %c0_15] : memref<1024x512xbf16, #tpu.memory_space<vmem>>, vector<1024x512xbf16>
    %cst_16 = arith.constant dense<0.000000e+00> : vector<8x512xf32>
    %14 = tpu.matmul %2, %13, %cst_16 {dimension_numbers = #tpu.dot_dimension_numbers<[1], [0], [0], [1], [0, 0, 1, 1], [], []>} : vector<8x1024xbf16>, vector<1024x512xbf16>, vector<8x512xf32> -> vector<8x512xf32>
    %15 = vector.broadcast %3 : vector<1x512xf32> to vector<8x512xf32>
    %16 = arith.addf %14, %15 : vector<8x512xf32>
    %cst_17 = arith.constant 0.000000e+00 : f32
    %17 = vector.broadcast %cst_17 : f32 to vector<8x512xf32>
    %18 = arith.maximumf %16, %17 : vector<8x512xf32>
    %19 = arith.truncf %18 : vector<8x512xf32> to vector<8x512xbf16>
    %c0_18 = arith.constant 0 : index
    %c0_19 = arith.constant 0 : index
    %20 = vector.load %arg2[%c0_18, %c0_19] : memref<512x256xbf16, #tpu.memory_space<vmem>>, vector<512x256xbf16>
    %cst_20 = arith.constant dense<0.000000e+00> : vector<8x256xf32>
    %21 = tpu.matmul %19, %20, %cst_20 {dimension_numbers = #tpu.dot_dimension_numbers<[1], [0], [0], [1], [0, 0, 1, 1], [], []>} : vector<8x512xbf16>, vector<512x256xbf16>, vector<8x256xf32> -> vector<8x256xf32>
    %22 = vector.broadcast %4 : vector<1x256xf32> to vector<8x256xf32>
    %23 = arith.addf %21, %22 : vector<8x256xf32>
    %cst_21 = arith.constant 0.000000e+00 : f32
    %24 = vector.broadcast %cst_21 : f32 to vector<8x256xf32>
    %25 = arith.maximumf %23, %24 : vector<8x256xf32>
    %26 = arith.truncf %25 : vector<8x256xf32> to vector<8x256xbf16>
    %cst_22 = arith.constant dense<0.000000e+00> : vector<8x128xf32>
    %27 = tpu.matmul %26, %9, %cst_22 {dimension_numbers = #tpu.dot_dimension_numbers<[1], [0], [0], [1], [0, 0, 1, 1], [], []>} : vector<8x256xbf16>, vector<256x128xbf16>, vector<8x128xf32> -> vector<8x128xf32>
    %28 = vector.broadcast %5 : vector<1x128xf32> to vector<8x128xf32>
    %29 = arith.addf %27, %28 : vector<8x128xf32>
    %cst_23 = arith.constant 0.000000e+00 : f32
    %30 = vector.broadcast %cst_23 : f32 to vector<8x128xf32>
    %31 = arith.maximumf %29, %30 : vector<8x128xf32>
    %32 = arith.truncf %31 : vector<8x128xf32> to vector<8x128xbf16>
    %cst_24 = arith.constant dense<0.000000e+00> : vector<8x128xf32>
    %33 = tpu.matmul %32, %10, %cst_24 {dimension_numbers = #tpu.dot_dimension_numbers<[1], [0], [0], [1], [0, 0, 1, 1], [], []>} : vector<8x128xbf16>, vector<128x128xbf16>, vector<8x128xf32> -> vector<8x128xf32>
    %34 = vector.broadcast %6 : vector<1x128xf32> to vector<8x128xf32>
    %35 = arith.addf %33, %34 : vector<8x128xf32>
    %cst_25 = arith.constant 0.000000e+00 : f32
    %36 = vector.broadcast %cst_25 : f32 to vector<8x128xf32>
    %37 = arith.maximumf %35, %36 : vector<8x128xf32>
    %38 = arith.truncf %37 : vector<8x128xf32> to vector<8x128xbf16>
    %cst_26 = arith.constant dense<0.000000e+00> : vector<8x128xf32>
    %39 = tpu.matmul %38, %11, %cst_26 {dimension_numbers = #tpu.dot_dimension_numbers<[1], [0], [0], [1], [0, 0, 1, 1], [], []>} : vector<8x128xbf16>, vector<128x128xbf16>, vector<8x128xf32> -> vector<8x128xf32>
    %40 = vector.broadcast %7 : vector<1x128xf32> to vector<8x128xf32>
    %41 = arith.addf %39, %40 : vector<8x128xf32>
    %42 = arith.truncf %41 : vector<8x128xf32> to vector<8x128xbf16>
    %cst_27 = arith.constant dense<0.000000e+00> : vector<8x128xf32>
    %43 = tpu.matmul %42, %12, %cst_27 {dimension_numbers = #tpu.dot_dimension_numbers<[1], [0], [0], [1], [0, 0, 1, 1], [], []>} : vector<8x128xbf16>, vector<128x128xbf16>, vector<8x128xf32> -> vector<8x128xf32>
    %44 = vector.broadcast %8 : vector<1x128xf32> to vector<8x128xf32>
    %45 = arith.addf %43, %44 : vector<8x128xf32>
    %c0_28 = arith.constant 0 : index
    %c0_29 = arith.constant 0 : index
    %46 = vector.load %arg5[%c0_28, %c0_29] : memref<8x128xf32, #tpu.memory_space<vmem>>, vector<8x128xf32>
    tpu.vector_store %arg5[%c0_28, %c0_29], %45 {strides = array<i32>} : memref<8x128xf32, #tpu.memory_space<vmem>>, vector<8x128xf32>,
    return
  }
}

</mosaic_0001>

<bundles_post_ra>
// kernel: tpu_custom_call.1
= control target key start
LH: loop header
LB: loop body
LE: loop exit
PB: predicated region body
PF: predicated region fallthrough
CT: control target
= control target key end

     0   :  { %10 = vsyncpa [#allocation3], 0  ;;  %s5529_s0 = inlined_call_operand.hbm [shape: f32[8,4,1024], index: 0, kind: input, shape index: {}]   ;;  %s5530_s1 = inlined_call_operand.hbm [shape: bf16[1024,512], index: 1, kind: input, shape index: {}]   ;;  %s5531_s2 = inlined_call_operand.hbm [shape: bf16[512,256], index: 2, kind: input, shape index: {}]   ;;  %s5532_s3 = inlined_call_operand.hbm [shape: bf16[640,128], index: 3, kind: input, shape index: {}]   ;;  %s5533_s4 = inlined_call_operand.hbm [shape: f32[8,512], index: 4, kind: input, shape index: {}]   ;;  %s5534_s5 = inlined_call_operand.hbm [shape: f32[8,128], index: 5, kind: output, shape index: {}]  }
   0x1   :  { %11 = vsyncpa [#allocation6], 0 }
   0x2   :  { %12 = vsyncpa [#allocation9], 0 }
   0x3   :  { %13 = vsyncpa [#allocation4], 0  ;;  %s5031_s18 = smov [#allocation5]   ;;  %s4891_s22 = scalar_lea.hbm %s5530_s1, 32768 }
   0x4   :  { %s31_s19 = sshll.u32 %s5031_s18, 4  ;;  %p4892_p0 = scmp.ne.s32.totalorder %s5530_s1, %s4891_s22  ;;  %s32_s19 = int_to_ptr.vmem [resolvable:$true] %s31_s19 }
   0x5   :  { %p4895_p1 = scmp.lt.u32.totalorder %s4891_s22, %s5530_s1 }
   0x7   :  { %p4897_p2 = pnand %p4895_p1, %p4892_p0 }
   0x9   :  { %4900 = shalt.err (!%p4897_p2)
}
   0xa   :  { %s4901_s27 = scalar_lea.vmem %s32_s19, 32768  ;;  %p4906_p4 = scmp.lt.s32.totalorder %s32_s19, %s32_s19 }
   0xb   :  { %p4902_p3 = scmp.ne.s32.totalorder %s32_s19, %s4901_s27  ;;  %p4907_p5 = scmp.lt.s32.totalorder %s4901_s27, %s4901_s27 }
   0xd   :  { %p4908_p6 = por %p4907_p5, %p4906_p4 }
   0xf   :  { %p4909_p7 = pnand %p4908_p6, %p4902_p3 }
  0x11   :  { %4912 = shalt.err (!%p4909_p7)
}
  0x12   :  { %s5032_s28 = smov 256   ;;  %s5033_s29 = smov 16  }
  0x13   :  { %37 = dma.hbm_to_vmem [thread:$0]  %s5530_s1, 32768, %s32_s19, [#allocation6], %s5032_s28, %s5032_s28, %s5033_s29  }
  0x14   :  { %s5034_s7 = smov [#allocation8]   ;;  %s4913_s11 = scalar_lea.hbm %s5532_s3, 5120 }
  0x15   :  { %s55_s8 = sshll.u32 %s5034_s7, 4  ;;  %p4914_p8 = scmp.ne.s32.totalorder %s5532_s3, %s4913_s11  ;;  %s56_s8 = int_to_ptr.vmem [resolvable:$true] %s55_s8 }
  0x16   :  { %p4917_p9 = scmp.lt.u32.totalorder %s4913_s11, %s5532_s3 }
  0x18   :  { %p4919_p10 = pnand %p4917_p9, %p4914_p8 }
  0x1a   :  { %4922 = shalt.err (!%p4919_p10)
}
  0x1b   :  { %s4923_s16 = scalar_lea.vmem %s56_s8, 5120  ;;  %p4928_p12 = scmp.lt.s32.totalorder %s56_s8, %s56_s8 }
  0x1c   :  { %p4924_p11 = scmp.ne.s32.totalorder %s56_s8, %s4923_s16  ;;  %p4929_p13 = scmp.lt.s32.totalorder %s4923_s16, %s4923_s16 }
  0x1e   :  { %p4930_p0 = por %p4929_p13, %p4928_p12 }
  0x20   :  { %p4931_p1 = pnand %p4930_p0, %p4924_p11 }
  0x22   :  { %4934 = shalt.err (!%p4931_p1)
}
  0x23   :  { %s5035_s1 = smov 64   ;;  %s5036_s17 = smov 4  }
  0x24   :  { %61 = dma.hbm_to_vmem [thread:$0]  %s5532_s3, 5120, %s56_s8, [#allocation9], %s5035_s1, %s5035_s1, %s5036_s17  }
  0x25   :  { %s5037_s20 = smov [#allocation2]   ;;  %s4935_s24 = scalar_lea.hbm %s5529_s0, 4096 }
  0x26   :  { %s19_s21 = sshll.u32 %s5037_s20, 4  ;;  %p4936_p2 = scmp.ne.s32.totalorder %s5529_s0, %s4935_s24  ;;  %s20_s21 = int_to_ptr.vmem [resolvable:$true] %s19_s21 }
  0x27   :  { %p4939_p3 = scmp.lt.u32.totalorder %s4935_s24, %s5529_s0 }
  0x29   :  { %p4941_p4 = pnand %p4939_p3, %p4936_p2 }
  0x2b   :  { %4944 = shalt.err (!%p4941_p4)
}
  0x2c   :  { %s4945_s29 = scalar_lea.vmem %s20_s21, 4096  ;;  %p4950_p6 = scmp.lt.s32.totalorder %s20_s21, %s20_s21 }
  0x2d   :  { %p4946_p5 = scmp.ne.s32.totalorder %s20_s21, %s4945_s29  ;;  %p4951_p7 = scmp.lt.s32.totalorder %s4945_s29, %s4945_s29 }
  0x2f   :  { %p4952_p8 = por %p4951_p7, %p4950_p6 }
  0x31   :  { %p4953_p9 = pnand %p4952_p8, %p4946_p5 }
  0x33   :  { %4956 = shalt.err (!%p4953_p9)
}
  0x34   :  { %s5038_s3 = smov 512   ;;  %s5039_s30 = smov 32  }
  0x35   :  { %25 = dma.hbm_to_vmem [thread:$0]  %s5529_s0, 4096, %s20_s21, [#allocation3], %s5038_s3, %s5038_s3, %s5039_s30  }
  0x36   :  { %s5040_s8 = smov [#allocation7]   ;;  %s4957_s12 = scalar_lea.hbm %s5531_s2, 8192 }
  0x37   :  { %s43_s9 = sshll.u32 %s5040_s8, 4  ;;  %p4958_p10 = scmp.ne.s32.totalorder %s5531_s2, %s4957_s12  ;;  %s44_s9 = int_to_ptr.vmem [resolvable:$true] %s43_s9 }
  0x38   :  { %p4961_p11 = scmp.lt.u32.totalorder %s4957_s12, %s5531_s2 }
  0x3a   :  { %p4963_p12 = pnand %p4961_p11, %p4958_p10 }
  0x3c   :  { %4966 = shalt.err (!%p4963_p12)
}
  0x3d   :  { %s4967_s1 = scalar_lea.vmem %s44_s9, 8192  ;;  %p4972_p0 = scmp.lt.s32.totalorder %s44_s9, %s44_s9 }
  0x3e   :  { %p4968_p13 = scmp.ne.s32.totalorder %s44_s9, %s4967_s1  ;;  %p4973_p1 = scmp.lt.s32.totalorder %s4967_s1, %s4967_s1 }
  0x40   :  { %p4974_p2 = por %p4973_p1, %p4972_p0 }
  0x42   :  { %p4975_p3 = pnand %p4974_p2, %p4968_p13 }
  0x44   :  { %4978 = shalt.err (!%p4975_p3)
}
  0x45   :  { %s5041_s0 = smov 128   ;;  %s5042_s17 = smov 8  }
  0x46   :  { %49 = dma.hbm_to_vmem [thread:$0]  %s5531_s2, 8192, %s44_s9, [#allocation6], %s5041_s0, %s5041_s0, %s5042_s17  }
  0x47   :  { %s5043_s20 = smov [#allocation10]   ;;  %s4979_s24 = scalar_lea.hbm %s5533_s4, 512 }
  0x48   :  { %s68_s21 = sshll.u32 %s5043_s20, 4  ;;  %p4980_p4 = scmp.ne.s32.totalorder %s5533_s4, %s4979_s24  ;;  %s69_s21 = int_to_ptr.vmem [resolvable:$true] %s68_s21 }
  0x49   :  { %p4983_p5 = scmp.lt.u32.totalorder %s4979_s24, %s5533_s4 }
  0x4b   :  { %p4985_p6 = pnand %p4983_p5, %p4980_p4 }
  0x4d   :  { %4988 = shalt.err (!%p4985_p6)
}
  0x4e   :  { %s4989_s29 = scalar_lea.vmem %s69_s21, 512  ;;  %p4994_p8 = scmp.lt.s32.totalorder %s69_s21, %s69_s21 }
  0x4f   :  { %p4990_p7 = scmp.ne.s32.totalorder %s69_s21, %s4989_s29  ;;  %p4995_p9 = scmp.lt.s32.totalorder %s4989_s29, %s4989_s29 }
  0x51   :  { %p4996_p10 = por %p4995_p9, %p4994_p8 }
  0x53   :  { %p4997_p11 = pnand %p4996_p10, %p4990_p7 }
  0x55   :  { %5000 = shalt.err (!%p4997_p11)
}
  0x56   :  { %71 = dma.hbm_to_vmem [thread:$0]  %s5533_s4, 512, %s69_s21, [#allocation9]  }
  0x57   :  { %5023 = dma.done.wait [#allocation3], 4096  }
  0x58   :  { %5024 = vsyncadd [#allocation3], 4294963200 }
  0x59   :  { %5025 = dma.done.wait [#allocation6], 40960  }
  0x5a   :  { %5026 = vsyncadd [#allocation6], 4294926336 }
  0x5b   :  { %5027 = dma.done.wait [#allocation9], 5632  }
  0x5c   :  { %5028 = vsyncadd [#allocation9], 4294961664  ;;  %v4339_v0 = vld [vmem:[#allocation5 + $0x4] ss:$16 sps:$4 sm:$0xff]   ;;  %v4341_v1 = vld [vmem:[#allocation5 + $0xc] ss:$16 sps:$4 sm:$0xff]  }
  0x5d   :  { %2580 = vmatprep.subr.bf16.mxu0 %v4339_v0  ;;  %v4343_v2 = vld [vmem:[#allocation5] ss:$16 sps:$4 sm:$0xff]   ;;  %v4344_v3 = vld [vmem:[#allocation5 + $0x8] ss:$16 sps:$4 sm:$0xff]   ;;  %2744 = vmatprep.subr.bf16.mxu1 %v4341_v1  ;;  %v4345_v4 = vld [vmem:[#allocation5 + $0x24] ss:$16 sps:$4 sm:$0xff]  }
  0x5e   :  { %2581 = vmatpush1.bf16.msra.mxu0 %v4343_v2  ;;  %2745 = vmatpush1.bf16.msra.mxu1 %v4344_v3  ;;  %v4347_v5 = vld [vmem:[#allocation5 + $0x2c] ss:$16 sps:$4 sm:$0xff]   ;;  %v4349_v6 = vld [vmem:[#allocation5 + $0x20] ss:$16 sps:$4 sm:$0xff]   ;;  %v4350_v7 = vld [vmem:[#allocation5 + $0x28] ss:$16 sps:$4 sm:$0xff]  }
  0x5f   :  { %2582 = vmatprep.subr.bf16.mxu0 %v4345_v4  ;;  %2746 = vmatprep.subr.bf16.mxu1 %v4347_v5  ;;  %v4351_v8 = vld [vmem:[#allocation5 + $0x44] ss:$16 sps:$4 sm:$0xff]   ;;  %v4353_v9 = vld [vmem:[#allocation5 + $0x4c] ss:$16 sps:$4 sm:$0xff]   ;;  %v4355_v10 = vld [vmem:[#allocation5 + $0x40] ss:$16 sps:$4 sm:$0xff]  }
  0x60   :  { %v4356_v11 = vld [vmem:[#allocation5 + $0x48] ss:$16 sps:$4 sm:$0xff]   ;;  %v4357_v12 = vld [vmem:[#allocation5 + $0x64] ss:$16 sps:$4 sm:$0xff]   ;;  %v4359_v13 = vld [vmem:[#allocation5 + $0x6c] ss:$16 sps:$4 sm:$0xff]  }
  0x61   :  { %v4361_v14 = vld [vmem:[#allocation5 + $0x60] ss:$16 sps:$4 sm:$0xff]   ;;  %v4362_v15 = vld [vmem:[#allocation5 + $0x68] ss:$16 sps:$4 sm:$0xff]   ;;  %v4363_v16 = vld [vmem:[#allocation5 + $0x84] ss:$16 sps:$4 sm:$0xff]  }
  0x62   :  { %2583 = vmatpush1.bf16.msra.mxu0 %v4349_v6  ;;  %2747 = vmatpush1.bf16.msra.mxu1 %v4350_v7  ;;  %v4365_v17 = vld [vmem:[#allocation5 + $0x8c] ss:$16 sps:$4 sm:$0xff]   ;;  %v4367_v18 = vld [vmem:[#allocation5 + $0x80] ss:$16 sps:$4 sm:$0xff]   ;;  %v4368_v19 = vld [vmem:[#allocation5 + $0x88] ss:$16 sps:$4 sm:$0xff]  }
  0x63   :  { %2584 = vmatprep.subr.bf16.mxu0 %v4351_v8  ;;  %2748 = vmatprep.subr.bf16.mxu1 %v4353_v9  ;;  %v4369_v20 = vld [vmem:[#allocation5 + $0xa4] ss:$16 sps:$4 sm:$0xff]   ;;  %v4371_v21 = vld [vmem:[#allocation5 + $0xac] ss:$16 sps:$4 sm:$0xff]   ;;  %v4373_v22 = vld [vmem:[#allocation5 + $0xa0] ss:$16 sps:$4 sm:$0xff]  }
  0x64   :  { %v4374_v23 = vld [vmem:[#allocation5 + $0xa8] ss:$16 sps:$4 sm:$0xff]   ;;  %v4375_v24 = vld [vmem:[#allocation5 + $0xc4] ss:$16 sps:$4 sm:$0xff]   ;;  %v4377_v25 = vld [vmem:[#allocation5 + $0xcc] ss:$16 sps:$4 sm:$0xff]  }
  0x65   :  { %v4379_v26 = vld [vmem:[#allocation5 + $0xc0] ss:$16 sps:$4 sm:$0xff]   ;;  %v4380_v27 = vld [vmem:[#allocation5 + $0xc8] ss:$16 sps:$4 sm:$0xff]   ;;  %v4381_v28 = vld [vmem:[#allocation5 + $0xe4] ss:$16 sps:$4 sm:$0xff]  }
  0x66   :  { %2585 = vmatpush1.bf16.msra.mxu0 %v4355_v10  ;;  %2749 = vmatpush1.bf16.msra.mxu1 %v4356_v11  ;;  %v4383_v29 = vld [vmem:[#allocation5 + $0xec] ss:$16 sps:$4 sm:$0xff]   ;;  %v4385_v30 = vld [vmem:[#allocation5 + $0xe0] ss:$16 sps:$4 sm:$0xff]   ;;  %v4386_v31 = vld [vmem:[#allocation5 + $0xe8] ss:$16 sps:$4 sm:$0xff]  }
  0x67   :  { %2586 = vmatprep.subr.bf16.mxu0 %v4357_v12  ;;  %2750 = vmatprep.subr.bf16.mxu1 %v4359_v13  ;;  %v4387_v32 = vld [vmem:[#allocation5 + $0x104] ss:$16 sps:$4 sm:$0xff]   ;;  %v4389_v33 = vld [vmem:[#allocation5 + $0x10c] ss:$16 sps:$4 sm:$0xff]   ;;  %v4391_v34 = vld [vmem:[#allocation5 + $0x100] ss:$16 sps:$4 sm:$0xff]  }
  0x68   :  { %v4392_v35 = vld [vmem:[#allocation5 + $0x108] ss:$16 sps:$4 sm:$0xff]   ;;  %v4393_v36 = vld [vmem:[#allocation5 + $0x124] ss:$16 sps:$4 sm:$0xff]   ;;  %v4395_v37 = vld [vmem:[#allocation5 + $0x12c] ss:$16 sps:$4 sm:$0xff]  }
  0x69   :  { %v4397_v38 = vld [vmem:[#allocation5 + $0x120] ss:$16 sps:$4 sm:$0xff]   ;;  %v4398_v39 = vld [vmem:[#allocation5 + $0x128] ss:$16 sps:$4 sm:$0xff]   ;;  %v4399_v40 = vld [vmem:[#allocation5 + $0x144] ss:$16 sps:$4 sm:$0xff]  }
  0x6a   :  { %2587 = vmatpush1.bf16.msra.mxu0 %v4361_v14  ;;  %2751 = vmatpush1.bf16.msra.mxu1 %v4362_v15  ;;  %v4401_v41 = vld [vmem:[#allocation5 + $0x14c] ss:$16 sps:$4 sm:$0xff]   ;;  %v4403_v42 = vld [vmem:[#allocation5 + $0x140] ss:$16 sps:$4 sm:$0xff]   ;;  %v4404_v43 = vld [vmem:[#allocation5 + $0x148] ss:$16 sps:$4 sm:$0xff]  }
  0x6b   :  { %2588 = vmatprep.subr.bf16.mxu0 %v4363_v16  ;;  %2752 = vmatprep.subr.bf16.mxu1 %v4365_v17  ;;  %v4405_v44 = vld [vmem:[#allocation5 + $0x164] ss:$16 sps:$4 sm:$0xff]   ;;  %vm216_vm0 = vcmask 1043456   ;;  %v4407_v45 = vld [vmem:[#allocation5 + $0x16c] ss:$16 sps:$4 sm:$0xff]   ;;  %vm1221_vm1 = vcmask 1041409  }
  0x6c   :  { %v4409_v46 = vld [vmem:[#allocation5 + $0x160] ss:$16 sps:$4 sm:$0xff]   ;;  %v4410_v47 = vld [vmem:[#allocation5 + $0x168] ss:$16 sps:$4 sm:$0xff]   ;;  %v4411_v49 = vld [vmem:[#allocation5 + $0x184] ss:$16 sps:$4 sm:$0xff]  }
  0x6d   :  { %v88_v48 = vld [vmem:[#allocation2] sm:$0xff]  ;;  %v4413_v50 = vld [vmem:[#allocation5 + $0x18c] ss:$16 sps:$4 sm:$0xff]   ;;  %v4416_v9 = vld [vmem:[#allocation5 + $0x188] ss:$16 sps:$4 sm:$0xff]   ;;  %vm1223_vm2 = vcmask 1042434  }
  0x6e   :  { %2589 = vmatpush1.bf16.msra.mxu0 %v4367_v18  ;;  %2753 = vmatpush1.bf16.msra.mxu1 %v4368_v19  ;;  %v5137_v51 = vld [vmem:[#allocation2 + $0x20] sm:$0xff]  ;;  %v152_v54 = vcombine.high %v88_v48, %v88_v48  ;;  %v5144_v55 = vsel %vm216_vm0, %v88_v48, 0.0  ;;  %v4419_v19 = vld [vmem:[#allocation5 + $0x1ac] ss:$16 sps:$4 sm:$0xff]   ;;  %vm1225_vm3 = vcmask 1043459   ;;  %vm1227_vm4 = vcmask 1044484  }
  0x6f   :  { %2590 = vmatprep.subr.bf16.mxu0 %v4369_v20  ;;  %2754 = vmatprep.subr.bf16.mxu1 %v4371_v21  ;;  %v5139_v52 = vld [vmem:[#allocation2 + $0x40] sm:$0xff]  ;;  %v156_v59 = vcombine.high %v5137_v51, %v5137_v51  ;;  %v218_v62 = vrot.slane %v5144_v55, 4  ;;  %vm1229_vm5 = vcmask 1045509   ;;  %vm1231_vm6 = vcmask 1046534   ;;  %s5046_s4 = smov [#allocation11]  }
  0x70   :  { %v5141_v53 = vld [vmem:[#allocation2 + $0x60] sm:$0xff]  ;;  %v160_v60 = vcombine.high %v5139_v52, %v5139_v52  ;;  %v224_v3 = vsel %vm216_vm0, %v152_v54, 0.0  ;;  %vm1233_vm7 = vcmask 1047559   ;;  %vm5045_vm8 = vmmov 0   ;;  %s3809_s30 = sshll.u32 %s5046_s4, 4  ;;  %s3810_s30 = int_to_ptr.vmem [resolvable:$true] %s3809_s30 }
  0x71   :  { %v5146_v56 = vld [vmem:[#allocation2 + $0x80] sm:$0xff]  ;;  %v164_v61 = vcombine.high %v5141_v53, %v5141_v53  ;;  %v225_v6 = vrot.slane %v224_v3, 4  ;;  %v280_v7 = vsel %vm216_vm0, %v156_v59, 0.0  ;;  %s5001_s6 = scalar_lea.vmem %s3810_s30, 128  ;;  %p5006_p13 = scmp.lt.s32.totalorder %s3810_s30, %s3810_s30 }
  0x72   :  { %2591 = vmatpush1.bf16.msra.mxu0 %v4373_v22  ;;  %2755 = vmatpush1.bf16.msra.mxu1 %v4374_v23  ;;  %v5148_v57 = vld [vmem:[#allocation2 + $0xa0] sm:$0xff]  ;;  %v168_v0 = vcombine.high %v5146_v56, %v5146_v56  ;;  %v336_v8 = vsel %vm216_vm0, %v160_v60, 0.0  ;;  %v281_v10 = vrot.slane %v280_v7, 4  ;;  %p5002_p12 = scmp.ne.s32.totalorder %s3810_s30, %s5001_s6  ;;  %p5007_p0 = scmp.lt.s32.totalorder %s5001_s6, %s5001_s6 }
  0x73   :  { %2592 = vmatprep.subr.bf16.mxu0 %v4375_v24  ;;  %2756 = vmatprep.subr.bf16.mxu1 %v4377_v25  ;;  %v5150_v58 = vld [vmem:[#allocation2 + $0xc0] sm:$0xff]  ;;  %v172_v1 = vcombine.high %v5148_v57, %v5148_v57  ;;  %v337_v11 = vrot.slane %v336_v8, 4  ;;  %v392_v12 = vsel %vm216_vm0, %v164_v61, 0.0  ;;  %v226_v15 = vadd.f32 %v225_v6, %v224_v3 }
  0x74   :  { %v5159_v63 = vld [vmem:[#allocation2 + $0xe0] sm:$0xff]  ;;  %v176_v2 = vcombine.high %v5150_v58, %v5150_v58  ;;  %v448_v13 = vsel %vm216_vm0, %v168_v0, 0.0  ;;  %v393_v16 = vrot.slane %v392_v12, 4  ;;  %v282_v20 = vadd.f32 %v281_v10, %v280_v7  ;;  %p5008_p1 = por %p5007_p0, %p5006_p13 }
  0x75   :  { %v4415_v4 = vld [vmem:[#allocation5 + $0x180] ss:$16 sps:$4 sm:$0xff]   ;;  %v180_v5 = vcombine.high %v5159_v63, %v5159_v63  ;;  %v4417_v14 = vld [vmem:[#allocation5 + $0x1a4] ss:$16 sps:$4 sm:$0xff]   ;;  %v449_v17 = vrot.slane %v448_v13, 4  ;;  %v504_v18 = vsel %vm216_vm0, %v172_v1, 0.0  ;;  %v338_v21 = vadd.f32 %v337_v11, %v336_v8 }
  0x76   :  { %2593 = vmatpush1.bf16.msra.mxu0 %v4379_v26  ;;  %2757 = vmatpush1.bf16.msra.mxu1 %v4380_v27  ;;  %v505_v22 = vrot.slane %v504_v18, 4  ;;  %v560_v23 = vsel %vm216_vm0, %v176_v2, 0.0  ;;  %v4421_v24 = vld [vmem:[#allocation5 + $0x1a0] ss:$16 sps:$4 sm:$0xff]   ;;  %v227_v25 = vrot.slane %v226_v15, 2  ;;  %v394_v26 = vadd.f32 %v393_v16, %v392_v12  ;;  %p5009_p2 = pnand %p5008_p1, %p5002_p12 }
  0x77   :  { %2594 = vmatprep.subr.bf16.mxu0 %v4381_v28  ;;  %2758 = vmatprep.subr.bf16.mxu1 %v4383_v29  ;;  %v450_v27 = vadd.f32 %v449_v17, %v448_v13  ;;  %v561_v28 = vrot.slane %v560_v23, 4  ;;  %v283_v29 = vrot.slane %v282_v20, 2  ;;  %v4427_v48 = vld [vmem:[#allocation5 + $0x1c0] ss:$16 sps:$4 sm:$0xff]   ;;  %v4429_v61 = vld [vmem:[#allocation5 + $0x1e4] ss:$16 sps:$4 sm:$0xff]  }
  0x78   :  { %v4433_v13 = vld [vmem:[#allocation5 + $0x1e0] ss:$16 sps:$4 sm:$0xff]  }
  0x7a   :  { %2595 = vmatpush1.bf16.msra.mxu0 %v4385_v30  ;;  %2759 = vmatpush1.bf16.msra.mxu1 %v4386_v31  ;;  %v339_v30 = vrot.slane %v338_v21, 2  ;;  %v506_v31 = vadd.f32 %v505_v22, %v504_v18  ;;  %v4434_v18 = vld [vmem:[#allocation5 + $0x1e8] ss:$16 sps:$4 sm:$0xff]  }
  0x7b   :  { %2596 = vmatprep.subr.bf16.mxu0 %v4387_v32  ;;  %2760 = vmatprep.subr.bf16.mxu1 %v4389_v33  ;;  %v616_v32 = vsel %vm216_vm0, %v180_v5, 0.0  ;;  %v4422_v33 = vld [vmem:[#allocation5 + $0x1a8] ss:$16 sps:$4 sm:$0xff]  }
  0x7e   :  { %2597 = vmatpush1.bf16.msra.mxu0 %v4391_v34  ;;  %2761 = vmatpush1.bf16.msra.mxu1 %v4392_v35  ;;  %v4423_v34 = vld [vmem:[#allocation5 + $0x1c4] ss:$16 sps:$4 sm:$0xff]   ;;  %v228_v35 = vadd.f32 %v227_v25, %v226_v15 }
  0x7f   :  { %2598 = vmatprep.subr.bf16.mxu0 %v4393_v36  ;;  %2762 = vmatprep.subr.bf16.mxu1 %v4395_v37  ;;  %v395_v36 = vrot.slane %v394_v26, 2  ;;  %v451_v37 = vrot.slane %v450_v27, 2 }
  0x82   :  { %2599 = vmatpush1.bf16.msra.mxu0 %v4397_v38  ;;  %2763 = vmatpush1.bf16.msra.mxu1 %v4398_v39  ;;  %v562_v38 = vadd.f32 %v561_v28, %v560_v23  ;;  %v4425_v39 = vld [vmem:[#allocation5 + $0x1cc] ss:$16 sps:$4 sm:$0xff]   ;;  %v4445_v23 = vld [vmem:[#allocation5 + $0x204] ss:$16 sps:$4 sm:$0xff]  }
  0x83   :  { %2600 = vmatprep.subr.bf16.mxu0 %v4399_v40  ;;  %2764 = vmatprep.subr.bf16.mxu1 %v4401_v41  ;;  %v284_v40 = vadd.f32 %v283_v29, %v282_v20  ;;  %v340_v41 = vadd.f32 %v339_v30, %v338_v21  ;;  %v4448_v28 = vld [vmem:[#allocation5 + $0x20c] ss:$16 sps:$4 sm:$0xff]  }
  0x85   :  { %v341_v54 = vrot.slane %v340_v41, 1 }
  0x86   :  { %2601 = vmatpush1.bf16.msra.mxu0 %v4403_v42  ;;  %2765 = vmatpush1.bf16.msra.mxu1 %v4404_v43  ;;  %v507_v42 = vrot.slane %v506_v31, 2  ;;  %v617_v43 = vrot.slane %v616_v32, 4 }
  0x87   :  { %2602 = vmatprep.subr.bf16.mxu0 %v4405_v44  ;;  %2766 = vmatprep.subr.bf16.mxu1 %v4407_v45  ;;  %v229_v44 = vrot.slane %v228_v35, 1  ;;  %v396_v45 = vadd.f32 %v395_v36, %v394_v26  ;;  %v342_v6 = vadd.f32 %v341_v54, %v340_v41  ;;  %v273_v36 = vsel %vm216_vm0, %v5137_v51, 0.0 }
  0x88   :  { %v508_v59 = vadd.f32 %v507_v42, %v506_v31  ;;  %v618_v60 = vadd.f32 %v617_v43, %v616_v32  ;;  %v219_v32 = vadd.f32 %v218_v62, %v5144_v55  ;;  %v329_v55 = vsel %vm216_vm0, %v5139_v52, 0.0 }
  0x89   :  { %v230_v0 = vadd.f32 %v229_v44, %v228_v35  ;;  %v397_v1 = vrot.slane %v396_v45, 1  ;;  %v682_v17 = vpack.c.bf16 %v342_v6, %v342_v6  ;;  %v385_v62 = vsel %vm216_vm0, %v5141_v53, 0.0 }
  0x8a   :  { %2603 = vmatpush1.bf16.msra.mxu0 %v4409_v46  ;;  %2767 = vmatpush1.bf16.msra.mxu1 %v4410_v47  ;;  %v452_v46 = vadd.f32 %v451_v37, %v450_v27  ;;  %v563_v47 = vrot.slane %v562_v38, 2  ;;  %v509_v7 = vrot.slane %v508_v59, 1  ;;  %v619_v8 = vrot.slane %v618_v60, 2 }
  0x8b   :  { %2604 = vmatprep.subr.bf16.mxu0 %v4411_v49  ;;  %2768 = vmatprep.subr.bf16.mxu1 %v4413_v50  ;;  %v4428_v49 = vld [vmem:[#allocation5 + $0x1c8] ss:$16 sps:$4 sm:$0xff]   ;;  %v285_v50 = vrot.slane %v284_v40, 1  ;;  %v666_v12 = vpack.c.bf16 %v230_v0, %v230_v0  ;;  %v1174_v27 = vunpack.c.l.b16 %v682_v17  ;;  %v497_v0 = vsel %vm216_vm0, %v5148_v57, 0.0 }
  0x8c   :  { %v453_v2 = vrot.slane %v452_v46, 1  ;;  %v564_v3 = vadd.f32 %v563_v47, %v562_v38  ;;  %v620_v15 = vadd.f32 %v619_v8, %v618_v60 }
  0x8d   :  { %v286_v5 = vadd.f32 %v285_v50, %v284_v40  ;;  %v1158_v22 = vunpack.c.l.b16 %v666_v12  ;;  %v274_v40 = vrot.slane %v273_v36, 4 }
  0x8e   :  { %2605 = vmatpush1.bf16.msra.mxu0 %v4415_v4  ;;  %2769 = vmatpush1.bf16.msra.mxu1 %v4416_v9  ;;  %v4431_v4 = vld [vmem:[#allocation5 + $0x1ec] ss:$16 sps:$4 sm:$0xff]   ;;  %v398_v9 = vadd.f32 %v397_v1, %v396_v45  ;;  %v454_v10 = vadd.f32 %v453_v2, %v452_v46  ;;  %v565_v11 = vrot.slane %v564_v3, 1  ;;  %v330_v45 = vrot.slane %v329_v55, 4 }
  0x8f   :  { %2606 = vmatprep.subr.bf16.mxu0 %v4417_v14  ;;  %2770 = vmatprep.subr.bf16.mxu1 %v4419_v19  ;;  %v510_v14 = vadd.f32 %v509_v7, %v508_v59  ;;  %v674_v16 = vpack.c.bf16 %v286_v5, %v286_v5  ;;  %v275_v44 = vadd.f32 %v274_v40, %v273_v36  ;;  %v498_v7 = vrot.slane %v497_v0, 4 }
  0x90   :  { %v566_v19 = vadd.f32 %v565_v11, %v564_v3  ;;  %v690_v20 = vpack.c.bf16 %v398_v9, %v398_v9  ;;  %v698_v21 = vpack.c.bf16 %v454_v10, %v454_v10  ;;  %v331_v52 = vadd.f32 %v330_v45, %v329_v55 }
  0x91   :  { %v706_v25 = vpack.c.bf16 %v510_v14, %v510_v14  ;;  %v1166_v26 = vunpack.c.l.b16 %v674_v16  ;;  %v276_v59 = vrot.slane %v275_v44, 2  ;;  %v609_v11 = vsel %vm216_vm0, %v5159_v63, 0.0 }
  0x92   :  { %2607 = vmatpush1.bf16.msra.mxu0 %v4421_v24  ;;  %2771 = vmatpush1.bf16.msra.mxu1 %v4422_v33  ;;  %v621_v24 = vrot.slane %v620_v15, 1  ;;  %v714_v29 = vpack.c.bf16 %v566_v19, %v566_v19  ;;  %v1182_v30 = vunpack.c.l.b16 %v690_v20  ;;  %v1190_v31 = vunpack.c.l.b16 %v698_v21 }
  0x93   :  { %2608 = vmatprep.subr.bf16.mxu0 %v4423_v34  ;;  %2772 = vmatprep.subr.bf16.mxu1 %v4425_v39  ;;  %v1198_v34 = vunpack.c.l.b16 %v706_v25  ;;  %v1235_v35 = vsel %vm1221_vm1, %v1166_v26, %v1158_v22  ;;  %v220_v39 = vrot.slane %v219_v32, 2  ;;  %v277_v3 = vadd.f32 %v276_v59, %v275_v44 }
  0x94   :  { %v622_v33 = vadd.f32 %v621_v24, %v620_v15  ;;  %v1206_v37 = vunpack.c.l.b16 %v714_v29  ;;  %v1236_v38 = vsel %vm1223_vm2, %v1174_v27, %v1235_v35  ;;  %v610_v14 = vrot.slane %v609_v11, 4 }
  0x95   :  { %v1237_v42 = vsel %vm1225_vm3, %v1182_v30, %v1236_v38  ;;  %v221_v43 = vadd.f32 %v220_v39, %v219_v32  ;;  %v278_v8 = vrot.slane %v277_v3, 1 }
  0x96   :  { %2609 = vmatpush1.bf16.msra.mxu0 %v4427_v48  ;;  %2773 = vmatpush1.bf16.msra.mxu1 %v4428_v49  ;;  %v722_v41 = vpack.c.bf16 %v622_v33, %v622_v33  ;;  %v1238_v51 = vsel %vm1227_vm4, %v1190_v31, %v1237_v42  ;;  %v386_v48 = vrot.slane %v385_v62, 4  ;;  %v441_v49 = vsel %vm216_vm0, %v5146_v56, 0.0 }
  0x97   :  { %2610 = vmatprep.subr.bf16.mxu0 %v4429_v61  ;;  %2774 = vmatprep.subr.bf16.mxu1 %v4431_v4  ;;  %v1239_v47 = vsel %vm1229_vm5, %v1198_v34, %v1238_v51  ;;  %v222_v54 = vrot.slane %v221_v43, 1  ;;  %v442_v61 = vrot.slane %v441_v49, 4  ;;  %v332_v4 = vrot.slane %v331_v52, 2 }
  0x98   :  { %v1214_v46 = vunpack.c.l.b16 %v722_v41  ;;  %v1240_v50 = vsel %vm1231_vm6, %v1206_v37, %v1239_v47  ;;  %v387_v53 = vadd.f32 %v386_v48, %v385_v62  ;;  %v553_v56 = vsel %vm216_vm0, %v5150_v58, 0.0 }
  0x99   :  { %v223_v2 = vadd.f32 %v222_v54, %v221_v43  ;;  %v443_v6 = vadd.f32 %v442_v61, %v441_v49  ;;  %v333_v9 = vadd.f32 %v332_v4, %v331_v52  ;;  %v554_v10 = vrot.slane %v553_v56, 4  ;;  %v4443_v52 = vld [vmem:[#allocation5 + $0x200] ss:$16 sps:$4 sm:$0xff]   ;;  %v4452_v4 = vld [vmem:[#allocation5 + $0x228] ss:$16 sps:$4 sm:$0xff]  }
  0x9a   :  { %2611 = vmatpush1.bf16.msra.mxu0 %v4433_v13  ;;  %2775 = vmatpush1.bf16.msra.mxu1 %v4434_v18  ;;  %v1241_v60 = vsel %vm1233_vm7, %v1214_v46, %v1240_v50  ;;  %v388_v5 = vrot.slane %v387_v53, 2  ;;  %v499_v13 = vadd.f32 %v498_v7, %v497_v0  ;;  %v279_v15 = vadd.f32 %v278_v8, %v277_v3  ;;  %v4451_v0 = vld [vmem:[#allocation5 + $0x224] ss:$16 sps:$4 sm:$0xff]   ;;  %v4449_v3 = vld [vmem:[#allocation5 + $0x220] ss:$16 sps:$4 sm:$0xff]   ;;  %v5210_v8 = vld [vmem:[#allocation2 + $0x68] sm:$0xff] }
  0x9b   :  { %2621 = vmatprep.subr.bf16.mxu0 %v4445_v23  ;;  %2785 = vmatprep.subr.bf16.mxu1 %v4448_v28  ;;  %v1285_v1 = vpack.c.b16 %v1241_v60, %v1241_v60  ;;  %v444_v57 = vrot.slane %v443_v6, 2  ;;  %v334_v16 = vrot.slane %v333_v9, 1  ;;  %v555_v17 = vadd.f32 %v554_v10, %v553_v56  ;;  %v4457_v7 = vld [vmem:[#allocation5 + $0x244] ss:$16 sps:$4 sm:$0xff]   ;;  %v5208_v56 = vld [vmem:[#allocation2 + $0x48] sm:$0xff] }
  0x9c   :  { %v389_v12 = vadd.f32 %v388_v5, %v387_v53  ;;  %v665_v18 = vpack.c.bf16 %v223_v2, %v223_v2  ;;  %v500_v21 = vrot.slane %v499_v13, 2  ;;  %v611_v58 = vadd.f32 %v610_v14, %v609_v11  ;;  %v4446_v53 = vld [vmem:[#allocation5 + $0x208] ss:$16 sps:$4 sm:$0xff]   ;;  %v4454_v2 = vld [vmem:[#allocation5 + $0x22c] ss:$16 sps:$4 sm:$0xff]  }
  0x9d   :  { %2612 = vmatprep.mubr.bf16.mxu0 %v1285_v1  ;;  %2776 = vmatprep.mubr.bf16.mxu1 %v1285_v1  ;;  %v445_v20 = vadd.f32 %v444_v57, %v443_v6  ;;  %v335_v22 = vadd.f32 %v334_v16, %v333_v9  ;;  %v556_v23 = vrot.slane %v555_v17, 2  ;;  %v673_v24 = vpack.c.bf16 %v279_v15, %v279_v15  ;;  %v89_v5 = vld [vmem:[#allocation2 + $0x8] sm:$0xff] }
  0x9e   :  { %v390_v19 = vrot.slane %v389_v12, 1  ;;  %v1157_v25 = vunpack.c.l.b16 %v665_v18  ;;  %v501_v28 = vadd.f32 %v500_v21, %v499_v13  ;;  %v612_v63 = vrot.slane %v611_v58, 2  ;;  %v93_v6 = vld [vmem:[#allocation2 + $0x28] sm:$0xff] }
  0x9f   :  { %v446_v27 = vrot.slane %v445_v20, 1  ;;  %v557_v29 = vadd.f32 %v556_v23, %v555_v17  ;;  %v681_v30 = vpack.c.bf16 %v335_v22, %v335_v22  ;;  %v1165_v31 = vunpack.c.l.b16 %v673_v24  ;;  %v5212_v9 = vld [vmem:[#allocation2 + $0x88] sm:$0xff]  ;;  %v4455_v24 = vld [vmem:[#allocation5 + $0x240] ss:$16 sps:$4 sm:$0xff]  }
  0xa0   :  { %v391_v26 = vadd.f32 %v390_v19, %v389_v12  ;;  %v502_v33 = vrot.slane %v501_v28, 1  ;;  %v613_v34 = vadd.f32 %v612_v63, %v611_v58  ;;  %v153_v10 = vcombine.high %v89_v5, %v89_v5  ;;  %v5220_v13 = vld [vmem:[#allocation2 + $0xa8] sm:$0xff] }
  0xa1   :  { %v447_v32 = vadd.f32 %v446_v27, %v445_v20  ;;  %v558_v36 = vrot.slane %v557_v29, 1  ;;  %v1173_v37 = vunpack.c.l.b16 %v681_v30  ;;  %v1222_v38 = vsel %vm1221_vm1, %v1165_v31, %v1157_v25  ;;  %v5222_v14 = vld [vmem:[#allocation2 + $0xc8] sm:$0xff] }
  0xa2   :  { %v689_v35 = vpack.c.bf16 %v391_v26, %v391_v26  ;;  %v503_v39 = vadd.f32 %v502_v33, %v501_v28  ;;  %v614_v40 = vrot.slane %v613_v34, 1  ;;  %v157_v11 = vcombine.high %v93_v6, %v93_v6  ;;  %v5224_v15 = vld [vmem:[#allocation2 + $0xe8] sm:$0xff] }
  0xa3   :  { %v697_v41 = vpack.c.bf16 %v447_v32, %v447_v32  ;;  %v559_v55 = vadd.f32 %v558_v36, %v557_v29  ;;  %v1224_v62 = vsel %vm1223_vm2, %v1173_v37, %v1222_v38  ;;  %v5215_v12 = vsel %vm216_vm0, %v89_v5, 0.0  ;;  %v4460_v20 = vld [vmem:[#allocation5 + $0x24c] ss:$16 sps:$4 sm:$0xff]   ;;  %v4458_v32 = vld [vmem:[#allocation5 + $0x248] ss:$16 sps:$4 sm:$0xff]  }
  0xa4   :  { %v1181_v42 = vunpack.c.l.b16 %v689_v35  ;;  %v615_v51 = vadd.f32 %v614_v40, %v613_v34  ;;  %v705_v43 = vpack.c.bf16 %v503_v39, %v503_v39  ;;  %v5218_v57 = vsel %vm216_vm0, %v93_v6, 0.0  ;;  %v4463_v37 = vld [vmem:[#allocation5 + $0x264] ss:$16 sps:$4 sm:$0xff]   ;;  %v4466_v38 = vld [vmem:[#allocation5 + $0x26c] ss:$16 sps:$4 sm:$0xff]  }
  0xa5   :  { %v1189_v44 = vunpack.c.l.b16 %v697_v41  ;;  %v713_v46 = vpack.c.bf16 %v559_v55, %v559_v55  ;;  %v161_v16 = vcombine.high %v5208_v56, %v5208_v56  ;;  %v165_v17 = vcombine.high %v5210_v8, %v5210_v8 }
  0xa6   :  { %v1226_v45 = vsel %vm1225_vm3, %v1181_v42, %v1224_v62  ;;  %v721_v47 = vpack.c.bf16 %v615_v51, %v615_v51  ;;  %v1197_v48 = vunpack.c.l.b16 %v705_v43  ;;  %v169_v18 = vcombine.high %v5212_v9, %v5212_v9 }
  0xa7   :  { %v1228_v49 = vsel %vm1227_vm4, %v1189_v44, %v1226_v45  ;;  %v1205_v50 = vunpack.c.l.b16 %v713_v46  ;;  %v232_v19 = vrot.slane %v5215_v12, 4  ;;  %v173_v21 = vcombine.high %v5220_v13, %v5220_v13  ;;  %v4461_v44 = vld [vmem:[#allocation5 + $0x260] ss:$16 sps:$4 sm:$0xff]  }
  0xa8   :  { %v1213_v54 = vunpack.c.l.b16 %v721_v47  ;;  %v1230_v59 = vsel %vm1229_vm5, %v1197_v48, %v1228_v49  ;;  %v177_v58 = vcombine.high %v5222_v14, %v5222_v14  ;;  %v181_v22 = vcombine.high %v5224_v15, %v5224_v15  ;;  %v4464_v49 = vld [vmem:[#allocation5 + $0x268] ss:$16 sps:$4 sm:$0xff]  }
  0xa9   :  { %v1232_v60 = vsel %vm1231_vm6, %v1205_v50, %v1230_v59  ;;  %v238_v23 = vsel %vm216_vm0, %v153_v10, 0.0  ;;  %v294_v26 = vsel %vm216_vm0, %v157_v11, 0.0  ;;  %v350_v27 = vsel %vm216_vm0, %v161_v16, 0.0 }
  0xaa   :  { %v1234_v61 = vsel %vm1233_vm7, %v1213_v54, %v1232_v60  ;;  %v239_v25 = vrot.slane %v238_v23, 4  ;;  %v406_v28 = vsel %vm216_vm0, %v165_v17, 0.0  ;;  %v295_v63 = vrot.slane %v294_v26, 4  ;;  %v4469_v60 = vld [vmem:[#allocation5 + $0x284] ss:$16 sps:$4 sm:$0xff]  }
  0xab   :  { %v1284_v1 = vpack.c.b16 %v1234_v61, %v1234_v61  ;;  %v351_v29 = vrot.slane %v350_v27, 4  ;;  %v407_v30 = vrot.slane %v406_v28, 4  ;;  %v462_v31 = vsel %vm216_vm0, %v169_v18, 0.0  ;;  %v4470_v18 = vld [vmem:[#allocation5 + $0x288] ss:$16 sps:$4 sm:$0xff]  }
  0xac   :  { %v240_v33 = vadd.f32 %v239_v25, %v238_v23  ;;  %v463_v34 = vrot.slane %v462_v31, 4  ;;  %v518_v35 = vsel %vm216_vm0, %v173_v21, 0.0  ;;  %v574_v36 = vsel %vm216_vm0, %v177_v58, 0.0 }
  0xad   :  { %2613 = vmatmul.mubr.bf16.vlgmr.msra.gmra.mrb[0].mxu0 %v1284_v1  ;;  %2777 = vmatmul.mubr.bf16.vlgmr.msra.gmra.mrb[0].mxu1 %v1284_v1  ;;  %v296_v39 = vadd.f32 %v295_v63, %v294_v26  ;;  %v352_v40 = vadd.f32 %v351_v29, %v350_v27  ;;  %v408_v41 = vadd.f32 %v407_v30, %v406_v28  ;;  %v519_v42 = vrot.slane %v518_v35, 4 }
  0xae   :  { %2622 = vmatpush1.bf16.msra.mxu0 %v4443_v52  ;;  %2786 = vmatpush1.bf16.msra.mxu1 %v4446_v53  ;;  %v241_v55 = vrot.slane %v240_v33, 2  ;;  %v464_v62 = vadd.f32 %v463_v34, %v462_v31  ;;  %v575_v51 = vrot.slane %v574_v36, 4  ;;  %v630_v43 = vsel %vm216_vm0, %v181_v22, 0.0  ;;  %v4472_v53 = vld [vmem:[#allocation5 + $0x28c] ss:$16 sps:$4 sm:$0xff]  }
  0xaf   :  { %2623 = vmatprep.subr.bf16.mxu0 %v4451_v0  ;;  %2787 = vmatprep.subr.bf16.mxu1 %v4454_v2  ;;  %v297_v45 = vrot.slane %v296_v39, 2  ;;  %v353_v46 = vrot.slane %v352_v40, 2  ;;  %v409_v47 = vrot.slane %v408_v41, 2  ;;  %v520_v48 = vadd.f32 %v519_v42, %v518_v35 }
  0xb0   :  { %v242_v50 = vadd.f32 %v241_v55, %v240_v33  ;;  %v465_v54 = vrot.slane %v464_v62, 2  ;;  %v576_v59 = vadd.f32 %v575_v51, %v574_v36  ;;  %v631_v52 = vrot.slane %v630_v43, 4  ;;  %v4484_v55 = vld [vmem:[#allocation5 + $0x2cc] ss:$16 sps:$4 sm:$0xff]  }
  0xb1   :  { %v298_v61 = vadd.f32 %v297_v45, %v296_v39  ;;  %v354_v0 = vadd.f32 %v353_v46, %v352_v40  ;;  %v410_v1 = vadd.f32 %v409_v47, %v408_v41  ;;  %v521_v2 = vrot.slane %v520_v48, 2 }
  0xb2   :  { %2624 = vmatpush1.bf16.msra.mxu0 %v4449_v3  ;;  %2788 = vmatpush1.bf16.msra.mxu1 %v4452_v4  ;;  %v243_v3 = vrot.slane %v242_v50, 1  ;;  %v466_v4 = vadd.f32 %v465_v54, %v464_v62  ;;  %v577_v5 = vrot.slane %v576_v59, 2  ;;  %v632_v6 = vadd.f32 %v631_v52, %v630_v43 }
  0xb3   :  { %2625 = vmatprep.subr.bf16.mxu0 %v4457_v7  ;;  %2789 = vmatprep.subr.bf16.mxu1 %v4460_v20  ;;  %v4467_v7 = vld [vmem:[#allocation5 + $0x280] ss:$16 sps:$4 sm:$0xff]   ;;  %v299_v10 = vrot.slane %v298_v61, 1  ;;  %v355_v11 = vrot.slane %v354_v0, 1  ;;  %v411_v16 = vrot.slane %v410_v1, 1  ;;  %v522_v17 = vadd.f32 %v521_v2, %v520_v48 }
  0xb4   :  { %v4475_v20 = vld [vmem:[#allocation5 + $0x2a4] ss:$16 sps:$4 sm:$0xff]   ;;  %v244_v21 = vadd.f32 %v243_v3, %v242_v50  ;;  %v467_v58 = vrot.slane %v466_v4, 1  ;;  %v578_v22 = vadd.f32 %v577_v5, %v576_v59  ;;  %v633_v23 = vrot.slane %v632_v6, 2  ;;  %v4482_v50 = vld [vmem:[#allocation5 + $0x2c8] ss:$16 sps:$4 sm:$0xff]  }
  0xb5   :  { %v300_v25 = vadd.f32 %v299_v10, %v298_v61  ;;  %v356_v26 = vadd.f32 %v355_v11, %v354_v0  ;;  %v412_v27 = vadd.f32 %v411_v16, %v410_v1  ;;  %v523_v28 = vrot.slane %v522_v17, 1  ;;  %v4485_v11 = vld [vmem:[#allocation5 + $0x2e0] ss:$16 sps:$4 sm:$0xff]  }
  0xb6   :  { %2626 = vmatpush1.bf16.msra.mxu0 %v4455_v24  ;;  %2790 = vmatpush1.bf16.msra.mxu1 %v4458_v32  ;;  %v4478_v24 = vld [vmem:[#allocation5 + $0x2ac] ss:$16 sps:$4 sm:$0xff]   ;;  %v468_v63 = vadd.f32 %v467_v58, %v466_v4  ;;  %v579_v29 = vrot.slane %v578_v22, 1  ;;  %v634_v30 = vadd.f32 %v633_v23, %v632_v6  ;;  %v668_v31 = vpack.c.bf16 %v244_v21, %v244_v21  ;;  %v4473_v32 = vld [vmem:[#allocation5 + $0x2a0] ss:$16 sps:$4 sm:$0xff]  }
  0xb7   :  { %2627 = vmatprep.subr.bf16.mxu0 %v4463_v37  ;;  %2791 = vmatprep.subr.bf16.mxu1 %v4466_v38  ;;  %v524_v33 = vadd.f32 %v523_v28, %v522_v17  ;;  %v676_v34 = vpack.c.bf16 %v300_v25, %v300_v25  ;;  %v684_v35 = vpack.c.bf16 %v356_v26, %v356_v26  ;;  %v4476_v37 = vld [vmem:[#allocation5 + $0x2a8] ss:$16 sps:$4 sm:$0xff]   ;;  %v4481_v38 = vld [vmem:[#allocation5 + $0x2c4] ss:$16 sps:$4 sm:$0xff]   ;;  %v288_v52 = vrot.slane %v5218_v57, 4 }
  0xb8   :  { %v692_v36 = vpack.c.bf16 %v412_v27, %v412_v27  ;;  %v580_v39 = vadd.f32 %v579_v29, %v578_v22  ;;  %v635_v40 = vrot.slane %v634_v30, 1  ;;  %v700_v41 = vpack.c.bf16 %v468_v63, %v468_v63  ;;  %v4493_v23 = vld [vmem:[#allocation5 + $0x304] ss:$16 sps:$4 sm:$0xff]  }
  0xb9   :  { %v1160_v42 = vunpack.c.l.b16 %v668_v31  ;;  %v708_v62 = vpack.c.bf16 %v524_v33, %v524_v33  ;;  %v1168_v51 = vunpack.c.l.b16 %v676_v34  ;;  %v1176_v43 = vunpack.c.l.b16 %v684_v35 }
  0xba   :  { %2628 = vmatpush1.bf16.msra.mxu0 %v4461_v44  ;;  %2792 = vmatpush1.bf16.msra.mxu1 %v4464_v49  ;;  %v1184_v44 = vunpack.c.l.b16 %v692_v36  ;;  %v636_v45 = vadd.f32 %v635_v40, %v634_v30  ;;  %v716_v46 = vpack.c.bf16 %v580_v39, %v580_v39  ;;  %v1192_v47 = vunpack.c.l.b16 %v700_v41  ;;  %v4479_v49 = vld [vmem:[#allocation5 + $0x2c0] ss:$16 sps:$4 sm:$0xff]   ;;  %v4494_v36 = vld [vmem:[#allocation5 + $0x308] ss:$16 sps:$4 sm:$0xff]   ;;  %v4499_v40 = vld [vmem:[#allocation5 + $0x324] ss:$16 sps:$4 sm:$0xff]  }
  0xbb   :  { %2629 = vmatprep.subr.bf16.mxu0 %v4469_v60  ;;  %2793 = vmatprep.subr.bf16.mxu1 %v4472_v53  ;;  %v233_v48 = vadd.f32 %v232_v19, %v5215_v12  ;;  %v1200_v54 = vunpack.c.l.b16 %v708_v62  ;;  %v1249_v59 = vsel %vm1221_vm1, %v1168_v51, %v1160_v42  ;;  %v343_v60 = vsel %vm216_vm0, %v5208_v56, 0.0  ;;  %v4487_v53 = vld [vmem:[#allocation5 + $0x2e4] ss:$16 sps:$4 sm:$0xff]   ;;  %v4490_v12 = vld [vmem:[#allocation5 + $0x2ec] ss:$16 sps:$4 sm:$0xff]  }
  0xbc   :  { %v724_v61 = vpack.c.bf16 %v636_v45, %v636_v45  ;;  %v1208_v0 = vunpack.c.l.b16 %v716_v46  ;;  %v1250_v1 = vsel %vm1223_vm2, %v1176_v43, %v1249_v59  ;;  %v289_v3 = vadd.f32 %v288_v52, %v5218_v57  ;;  %v4488_v57 = vld [vmem:[#allocation5 + $0x2e8] ss:$16 sps:$4 sm:$0xff]   ;;  %v4502_v41 = vld [vmem:[#allocation5 + $0x32c] ss:$16 sps:$4 sm:$0xff]   ;;  %v4497_v46 = vld [vmem:[#allocation5 + $0x320] ss:$16 sps:$4 sm:$0xff]  }
  0xbd   :  { %v234_v2 = vrot.slane %v233_v48, 2  ;;  %v1251_v19 = vsel %vm1225_vm3, %v1184_v44, %v1250_v1  ;;  %v344_v4 = vrot.slane %v343_v60, 4  ;;  %v399_v5 = vsel %vm216_vm0, %v5210_v8, 0.0 }
  0xbe   :  { %2630 = vmatpush1.bf16.msra.mxu0 %v4467_v7  ;;  %2794 = vmatpush1.bf16.msra.mxu1 %v4470_v18  ;;  %v1216_v56 = vunpack.c.l.b16 %v724_v61  ;;  %v1252_v6 = vsel %vm1227_vm4, %v1192_v47, %v1251_v19  ;;  %v400_v10 = vrot.slane %v399_v5, 4  ;;  %v290_v17 = vrot.slane %v289_v3, 2  ;;  %v4508_v61 = vld [vmem:[#allocation5 + $0x34c] ss:$16 sps:$4 sm:$0xff]  }
  0xbf   :  { %2631 = vmatprep.subr.bf16.mxu0 %v4475_v20  ;;  %2795 = vmatprep.subr.bf16.mxu1 %v4478_v24  ;;  %v235_v7 = vadd.f32 %v234_v2, %v233_v48  ;;  %v1253_v16 = vsel %vm1229_vm5, %v1200_v54, %v1252_v6  ;;  %v345_v18 = vadd.f32 %v344_v4, %v343_v60  ;;  %v455_v20 = vsel %vm216_vm0, %v5212_v9, 0.0  ;;  %v4496_v24 = vld [vmem:[#allocation5 + $0x30c] ss:$16 sps:$4 sm:$0xff]   ;;  %v4491_v9 = vld [vmem:[#allocation5 + $0x300] ss:$16 sps:$4 sm:$0xff]  }
  0xc0   :  { %v1254_v21 = vsel %vm1231_vm6, %v1208_v0, %v1253_v16  ;;  %v401_v8 = vadd.f32 %v400_v10, %v399_v5  ;;  %v456_v22 = vrot.slane %v455_v20, 4  ;;  %v291_v26 = vadd.f32 %v290_v17, %v289_v3  ;;  %v4503_v5 = vld [vmem:[#allocation5 + $0x340] ss:$16 sps:$4 sm:$0xff]   ;;  %v4511_v16 = vld [vmem:[#allocation5 + $0x364] ss:$16 sps:$4 sm:$0xff]  }
  0xc1   :  { %v236_v58 = vrot.slane %v235_v7, 1  ;;  %v1255_v25 = vsel %vm1233_vm7, %v1216_v56, %v1254_v21  ;;  %v346_v27 = vrot.slane %v345_v18, 2  ;;  %v511_v28 = vsel %vm216_vm0, %v5220_v13, 0.0 }
  0xc2   :  { %2632 = vmatpush1.bf16.msra.mxu0 %v4473_v32  ;;  %2796 = vmatpush1.bf16.msra.mxu1 %v4476_v37  ;;  %v1287_v63 = vpack.c.b16 %v1255_v25, %v1255_v25  ;;  %v402_v30 = vrot.slane %v401_v8, 2  ;;  %v457_v31 = vadd.f32 %v456_v22, %v455_v20  ;;  %v292_v32 = vrot.slane %v291_v26, 1  ;;  %v4509_v25 = vld [vmem:[#allocation5 + $0x360] ss:$16 sps:$4 sm:$0xff]  }
  0xc3   :  { %2633 = vmatprep.subr.bf16.mxu0 %v4481_v38  ;;  %2797 = vmatprep.subr.bf16.mxu1 %v4484_v55  ;;  %v237_v29 = vadd.f32 %v236_v58, %v235_v7  ;;  %v347_v33 = vadd.f32 %v346_v27, %v345_v18  ;;  %v512_v34 = vrot.slane %v511_v28, 4  ;;  %v567_v35 = vsel %vm216_vm0, %v5222_v14, 0.0 }
  0xc4   :  { %v403_v37 = vadd.f32 %v402_v30, %v401_v8  ;;  %v458_v38 = vrot.slane %v457_v31, 2  ;;  %v568_v39 = vrot.slane %v567_v35, 4  ;;  %v623_v13 = vsel %vm216_vm0, %v5224_v15, 0.0  ;;  %2653 = vmatprep.mubr.bf16.mxu0 %v1287_v63  ;;  %2817 = vmatprep.mubr.bf16.mxu1 %v1287_v63  ;;  %v4500_v15 = vld [vmem:[#allocation5 + $0x328] ss:$16 sps:$4 sm:$0xff]  }
  0xc5   :  { %v293_v42 = vadd.f32 %v292_v32, %v291_v26  ;;  %v348_v55 = vrot.slane %v347_v33, 1  ;;  %v513_v62 = vadd.f32 %v512_v34, %v511_v28  ;;  %v624_v51 = vrot.slane %v623_v13, 4  ;;  %v4512_v28 = vld [vmem:[#allocation5 + $0x368] ss:$16 sps:$4 sm:$0xff]   ;;  %v4520_v30 = vld [vmem:[#allocation5 + $0x38c] ss:$16 sps:$4 sm:$0xff]  }
  0xc6   :  { %2634 = vmatpush1.bf16.msra.mxu0 %v4479_v49  ;;  %2798 = vmatpush1.bf16.msra.mxu1 %v4482_v50  ;;  %v404_v14 = vrot.slane %v403_v37, 1  ;;  %v459_v43 = vadd.f32 %v458_v38, %v457_v31  ;;  %v569_v44 = vadd.f32 %v568_v39, %v567_v35  ;;  %v667_v45 = vpack.c.bf16 %v237_v29, %v237_v29  ;;  %v4515_v34 = vld [vmem:[#allocation5 + $0x380] ss:$16 sps:$4 sm:$0xff]   ;;  %v4523_v38 = vld [vmem:[#allocation5 + $0x3a4] ss:$16 sps:$4 sm:$0xff]  }
  0xc7   :  { %2635 = vmatprep.subr.bf16.mxu0 %v4487_v53  ;;  %2799 = vmatprep.subr.bf16.mxu1 %v4490_v12  ;;  %v349_v47 = vadd.f32 %v348_v55, %v347_v33  ;;  %v514_v48 = vrot.slane %v513_v62, 2  ;;  %v625_v49 = vadd.f32 %v624_v51, %v623_v13  ;;  %v675_v50 = vpack.c.bf16 %v293_v42, %v293_v42  ;;  %v4505_v53 = vld [vmem:[#allocation5 + $0x344] ss:$16 sps:$4 sm:$0xff]   ;;  %v4526_v13 = vld [vmem:[#allocation5 + $0x3ac] ss:$16 sps:$4 sm:$0xff]  }
  0xc8   :  { %v405_v54 = vadd.f32 %v404_v14, %v403_v37  ;;  %v460_v59 = vrot.slane %v459_v43, 1  ;;  %v570_v52 = vrot.slane %v569_v44, 2  ;;  %v1159_v60 = vunpack.c.l.b16 %v667_v45  ;;  %v4518_v37 = vld [vmem:[#allocation5 + $0x388] ss:$16 sps:$4 sm:$0xff]   ;;  %v4529_v55 = vld [vmem:[#allocation5 + $0x3c4] ss:$16 sps:$4 sm:$0xff]  }
  0xc9   :  { %v515_v0 = vadd.f32 %v514_v48, %v513_v62  ;;  %v626_v1 = vrot.slane %v625_v49, 2  ;;  %v683_v2 = vpack.c.bf16 %v349_v47, %v349_v47  ;;  %v1167_v12 = vunpack.c.l.b16 %v675_v50  ;;  %v4524_v42 = vld [vmem:[#allocation5 + $0x3a8] ss:$16 sps:$4 sm:$0xff]   ;;  %v4532_v62 = vld [vmem:[#allocation5 + $0x3cc] ss:$16 sps:$4 sm:$0xff]   ;;  %v90_v51 = vld [vmem:[#allocation2 + $0x10] sm:$0xff] }
  0xca   :  { %2636 = vmatpush1.bf16.msra.mxu0 %v4485_v11  ;;  %2800 = vmatpush1.bf16.msra.mxu1 %v4488_v57  ;;  %v461_v19 = vadd.f32 %v460_v59, %v459_v43  ;;  %v571_v3 = vadd.f32 %v570_v52, %v569_v44  ;;  %v691_v4 = vpack.c.bf16 %v405_v54, %v405_v54  ;;  %v4506_v11 = vld [vmem:[#allocation5 + $0x348] ss:$16 sps:$4 sm:$0xff]   ;;  %v4514_v57 = vld [vmem:[#allocation5 + $0x36c] ss:$16 sps:$4 sm:$0xff]   ;;  %v5280_v43 = vld [vmem:[#allocation2 + $0x30] sm:$0xff]  ;;  %v5287_v47 = vsel %vm216_vm0, %v90_v51, 0.0 }
  0xcb   :  { %2637 = vmatprep.subr.bf16.mxu0 %v4493_v23  ;;  %2801 = vmatprep.subr.bf16.mxu1 %v4496_v24  ;;  %v516_v56 = vrot.slane %v515_v0, 1  ;;  %v627_v6 = vadd.f32 %v626_v1, %v625_v49  ;;  %v1175_v7 = vunpack.c.l.b16 %v683_v2  ;;  %v1242_v10 = vsel %vm1221_vm1, %v1167_v12, %v1159_v60  ;;  %v5282_v44 = vld [vmem:[#allocation2 + $0x50] sm:$0xff]  ;;  %v4530_v12 = vld [vmem:[#allocation5 + $0x3c8] ss:$16 sps:$4 sm:$0xff]  }
  0xcc   :  { %v572_v17 = vrot.slane %v571_v3, 1  ;;  %v699_v18 = vpack.c.bf16 %v461_v19, %v461_v19  ;;  %v1183_v20 = vunpack.c.l.b16 %v691_v4  ;;  %v5284_v45 = vld [vmem:[#allocation2 + $0x70] sm:$0xff]  ;;  %v162_v54 = vcombine.high %v5282_v44, %v5282_v44 }
  0xcd   :  { %v517_v21 = vadd.f32 %v516_v56, %v515_v0  ;;  %v628_v58 = vrot.slane %v627_v6, 1  ;;  %v1243_v8 = vsel %vm1223_vm2, %v1175_v7, %v1242_v10  ;;  %v5289_v48 = vld [vmem:[#allocation2 + $0x90] sm:$0xff]  ;;  %v166_v59 = vcombine.high %v5284_v45, %v5284_v45 }
  0xce   :  { %2638 = vmatpush1.bf16.msra.mxu0 %v4491_v9  ;;  %2802 = vmatpush1.bf16.msra.mxu1 %v4494_v36  ;;  %v573_v22 = vadd.f32 %v572_v17, %v571_v3  ;;  %v1191_v23 = vunpack.c.l.b16 %v699_v18  ;;  %v1244_v24 = vsel %vm1225_vm3, %v1183_v20, %v1243_v8  ;;  %v4517_v9 = vld [vmem:[#allocation5 + $0x384] ss:$16 sps:$4 sm:$0xff]   ;;  %v246_v52 = vrot.slane %v5287_v47, 4  ;;  %v4527_v60 = vld [vmem:[#allocation5 + $0x3c0] ss:$16 sps:$4 sm:$0xff]  }
  0xcf   :  { %2639 = vmatprep.subr.bf16.mxu0 %v4499_v40  ;;  %2803 = vmatprep.subr.bf16.mxu1 %v4502_v41  ;;  %v629_v26 = vadd.f32 %v628_v58, %v627_v6  ;;  %v707_v27 = vpack.c.bf16 %v517_v21, %v517_v21  ;;  %v4521_v41 = vld [vmem:[#allocation5 + $0x3a0] ss:$16 sps:$4 sm:$0xff]   ;;  %v4535_v56 = vld [vmem:[#allocation5 + $0x3e4] ss:$16 sps:$4 sm:$0xff]   ;;  %v420_v10 = vsel %vm216_vm0, %v166_v59, 0.0 }
  0xd0   :  { %v715_v63 = vpack.c.bf16 %v573_v22, %v573_v22  ;;  %v1245_v29 = vsel %vm1227_vm4, %v1191_v23, %v1244_v24  ;;  %v5291_v49 = vld [vmem:[#allocation2 + $0xb0] sm:$0xff]  ;;  %v421_v18 = vrot.slane %v420_v10, 4  ;;  %v4536_v24 = vld [vmem:[#allocation5 + $0x3e8] ss:$16 sps:$4 sm:$0xff]  }
  0xd1   :  { %v723_v31 = vpack.c.bf16 %v629_v26, %v629_v26  ;;  %v1199_v32 = vunpack.c.l.b16 %v707_v27  ;;  %v5293_v50 = vld [vmem:[#allocation2 + $0xd0] sm:$0xff]  ;;  %v174_v0 = vcombine.high %v5291_v49, %v5291_v49 }
  0xd2   :  { %2640 = vmatpush1.bf16.msra.mxu0 %v4497_v46  ;;  %2804 = vmatpush1.bf16.msra.mxu1 %v4500_v15  ;;  %v1207_v33 = vunpack.c.l.b16 %v715_v63  ;;  %v154_v46 = vcombine.high %v90_v51, %v90_v51  ;;  %v158_v15 = vcombine.high %v5280_v43, %v5280_v43  ;;  %v178_v1 = vcombine.high %v5293_v50, %v5293_v50  ;;  %v4533_v23 = vld [vmem:[#allocation5 + $0x3e0] ss:$16 sps:$4 sm:$0xff]   ;;  %v4550_v51 = vld [vmem:[#allocation5 + $0x408] ss:$16 sps:$4 sm:$0xff]  }
  0xd3   :  { %2641 = vmatprep.subr.bf16.mxu0 %v4505_v53  ;;  %2805 = vmatprep.subr.bf16.mxu1 %v4508_v61  ;;  %v1215_v35 = vunpack.c.l.b16 %v723_v31  ;;  %v1246_v36 = vsel %vm1229_vm5, %v1199_v32, %v1245_v29  ;;  %v5302_v53 = vld [vmem:[#allocation2 + $0xf0] sm:$0xff]  ;;  %v170_v61 = vcombine.high %v5289_v48, %v5289_v48  ;;  %v422_v26 = vadd.f32 %v421_v18, %v420_v10  ;;  %v4552_v32 = vld [vmem:[#allocation5 + $0x40c] ss:$16 sps:$4 sm:$0xff]  }
  0xd4   :  { %v1247_v39 = vsel %vm1231_vm6, %v1207_v33, %v1246_v36  ;;  %v252_v2 = vsel %vm216_vm0, %v154_v46, 0.0  ;;  %v182_v19 = vcombine.high %v5302_v53, %v5302_v53  ;;  %v308_v4 = vsel %vm216_vm0, %v158_v15, 0.0  ;;  %v4549_v31 = vld [vmem:[#allocation5 + $0x404] ss:$16 sps:$4 sm:$0xff]  }
  0xd5   :  { %v1248_v40 = vsel %vm1233_vm7, %v1215_v35, %v1247_v39  ;;  %v253_v3 = vrot.slane %v252_v2, 4  ;;  %v309_v6 = vrot.slane %v308_v4, 4  ;;  %v588_v22 = vsel %vm216_vm0, %v178_v1, 0.0  ;;  %v4555_v46 = vld [vmem:[#allocation5 + $0x424] ss:$16 sps:$4 sm:$0xff]  }
  0xd6   :  { %2642 = vmatpush1.bf16.msra.mxu0 %v4503_v5  ;;  %2806 = vmatpush1.bf16.msra.mxu1 %v4506_v11  ;;  %v5278_v14 = vpack.c.b16 %v1248_v40, %v1248_v40  ;;  %v364_v5 = vsel %vm216_vm0, %v162_v54, 0.0  ;;  %v476_v11 = vsel %vm216_vm0, %v170_v61, 0.0  ;;  %v4547_v40 = vld [vmem:[#allocation5 + $0x400] ss:$16 sps:$4 sm:$0xff]   ;;  %v4558_v61 = vld [vmem:[#allocation5 + $0x42c] ss:$16 sps:$4 sm:$0xff]  }
  0xd7   :  { %2643 = vmatprep.subr.bf16.mxu0 %v4511_v16  ;;  %2807 = vmatprep.subr.bf16.mxu1 %v4514_v57  ;;  %v365_v7 = vrot.slane %v364_v5, 4  ;;  %v4538_v16 = vld [vmem:[#allocation5 + $0x3ec] ss:$16 sps:$4 sm:$0xff]   ;;  %v254_v17 = vadd.f32 %v253_v3, %v252_v2  ;;  %v477_v20 = vrot.slane %v476_v11, 4  ;;  %v532_v57 = vsel %vm216_vm0, %v174_v0, 0.0 }
  0xd8   :  { %v310_v21 = vadd.f32 %v309_v6, %v308_v4  ;;  %v533_v8 = vrot.slane %v532_v57, 4 }
  0xd9   :  { %v366_v58 = vadd.f32 %v365_v7, %v364_v5  ;;  %v478_v27 = vadd.f32 %v477_v20, %v476_v11  ;;  %v4553_v11 = vld [vmem:[#allocation5 + $0x420] ss:$16 sps:$4 sm:$0xff]  }
  0xda   :  { %2644 = vmatpush1.bf16.msra.mxu0 %v4509_v25  ;;  %2808 = vmatpush1.bf16.msra.mxu1 %v4512_v28  ;;  %v255_v25 = vrot.slane %v254_v17, 2  ;;  %v589_v28 = vrot.slane %v588_v22, 4  ;;  %v534_v29 = vadd.f32 %v533_v8, %v532_v57  ;;  %v301_v57 = vsel %vm216_vm0, %v5280_v43, 0.0 }
  0xdb   :  { %2645 = vmatprep.subr.bf16.mxu0 %v4517_v9  ;;  %2809 = vmatprep.subr.bf16.mxu1 %v4520_v30  ;;  %v311_v9 = vrot.slane %v310_v21, 2  ;;  %v367_v63 = vrot.slane %v366_v58, 2  ;;  %v644_v30 = vsel %vm216_vm0, %v182_v19, 0.0  ;;  %v479_v35 = vrot.slane %v478_v27, 2 }
  0xdc   :  { %v256_v33 = vadd.f32 %v255_v25, %v254_v17  ;;  %v590_v36 = vadd.f32 %v589_v28, %v588_v22  ;;  %v535_v39 = vrot.slane %v534_v29, 2  ;;  %v4559_v28 = vld [vmem:[#allocation5 + $0x440] ss:$16 sps:$4 sm:$0xff]   ;;  %v247_v43 = vadd.f32 %v246_v52, %v5287_v47 }
  0xdd   :  { %v357_v52 = vsel %vm216_vm0, %v5282_v44, 0.0  ;;  %v469_v44 = vsel %vm216_vm0, %v5289_v48, 0.0 }
  0xde   :  { %2646 = vmatpush1.bf16.msra.mxu0 %v4515_v34  ;;  %2810 = vmatpush1.bf16.msra.mxu1 %v4518_v37  ;;  %v423_v34 = vrot.slane %v422_v26, 2  ;;  %v312_v37 = vadd.f32 %v311_v9, %v310_v21  ;;  %v536_v59 = vadd.f32 %v535_v39, %v534_v29  ;;  %v4561_v21 = vld [vmem:[#allocation5 + $0x444] ss:$16 sps:$4 sm:$0xff]   ;;  %v248_v39 = vrot.slane %v247_v43, 2 }
  0xdf   :  { %2647 = vmatprep.subr.bf16.mxu0 %v4523_v38  ;;  %2811 = vmatprep.subr.bf16.mxu1 %v4526_v13  ;;  %v368_v38 = vadd.f32 %v367_v63, %v366_v58  ;;  %v645_v13 = vrot.slane %v644_v30, 4  ;;  %v4564_v58 = vld [vmem:[#allocation5 + $0x44c] ss:$16 sps:$4 sm:$0xff]  }
  0xe0   :  { %v313_v15 = vrot.slane %v312_v37, 1  ;;  %v537_v4 = vrot.slane %v536_v59, 1 }
  0xe1   :  { %v369_v54 = vrot.slane %v368_v38, 1 }
  0xe2   :  { %2648 = vmatpush1.bf16.msra.mxu0 %v4521_v41  ;;  %2812 = vmatpush1.bf16.msra.mxu1 %v4524_v42  ;;  %v257_v41 = vrot.slane %v256_v33, 1  ;;  %v424_v42 = vadd.f32 %v423_v34, %v422_v26  ;;  %v314_v19 = vadd.f32 %v313_v15, %v312_v37  ;;  %v538_v17 = vadd.f32 %v537_v4, %v536_v59  ;;  %v4568_v15 = vld [vmem:[#allocation5 + $0x468] ss:$16 sps:$4 sm:$0xff]  }
  0xe3   :  { %2649 = vmatprep.subr.bf16.mxu0 %v4529_v55  ;;  %2813 = vmatprep.subr.bf16.mxu1 %v4532_v62  ;;  %v480_v55 = vadd.f32 %v479_v35, %v478_v27  ;;  %v591_v62 = vrot.slane %v590_v36, 2  ;;  %v370_v3 = vadd.f32 %v369_v54, %v368_v38  ;;  %v4573_v54 = vld [vmem:[#allocation5 + $0x484] ss:$16 sps:$4 sm:$0xff]   ;;  %v470_v4 = vrot.slane %v469_v44, 4 }
  0xe4   :  { %v258_v0 = vadd.f32 %v257_v41, %v256_v33  ;;  %v425_v1 = vrot.slane %v424_v42, 1  ;;  %v678_v20 = vpack.c.bf16 %v314_v19, %v314_v19  ;;  %v710_v26 = vpack.c.bf16 %v538_v17, %v538_v17 }
  0xe5   :  { %v481_v2 = vrot.slane %v480_v55, 1  ;;  %v413_v41 = vsel %vm216_vm0, %v5284_v45, 0.0  ;;  %v4576_v45 = vld [vmem:[#allocation5 + $0x48c] ss:$16 sps:$4 sm:$0xff]  }
  0xe6   :  { %2650 = vmatpush1.bf16.msra.mxu0 %v4527_v60  ;;  %2814 = vmatpush1.bf16.msra.mxu1 %v4530_v12  ;;  %v646_v60 = vadd.f32 %v645_v13, %v644_v30  ;;  %v592_v12 = vadd.f32 %v591_v62, %v590_v36  ;;  %v670_v10 = vpack.c.bf16 %v258_v0, %v258_v0  ;;  %v1170_v27 = vunpack.c.l.b16 %v678_v20  ;;  %v4562_v30 = vld [vmem:[#allocation5 + $0x448] ss:$16 sps:$4 sm:$0xff]   ;;  %v4570_v36 = vld [vmem:[#allocation5 + $0x46c] ss:$16 sps:$4 sm:$0xff]  }
  0xe7   :  { %2651 = vmatprep.subr.bf16.mxu0 %v4535_v56  ;;  %2815 = vmatprep.subr.bf16.mxu1 %v4538_v16  ;;  %v426_v56 = vadd.f32 %v425_v1, %v424_v42  ;;  %v482_v6 = vadd.f32 %v481_v2, %v480_v55  ;;  %v4556_v16 = vld [vmem:[#allocation5 + $0x428] ss:$16 sps:$4 sm:$0xff]   ;;  %v1202_v34 = vunpack.c.l.b16 %v710_v26  ;;  %v302_v13 = vrot.slane %v301_v57, 4  ;;  %v4565_v42 = vld [vmem:[#allocation5 + $0x460] ss:$16 sps:$4 sm:$0xff]  }
  0xe8   :  { %v647_v5 = vrot.slane %v646_v60, 2  ;;  %v593_v7 = vrot.slane %v592_v12, 1  ;;  %v249_v62 = vadd.f32 %v248_v39, %v247_v43  ;;  %v4577_v26 = vld [vmem:[#allocation5 + $0x4a0] ss:$16 sps:$4 sm:$0xff]  }
  0xe9   :  { %v694_v22 = vpack.c.bf16 %v426_v56, %v426_v56  ;;  %v702_v25 = vpack.c.bf16 %v482_v6, %v482_v6  ;;  %v4571_v56 = vld [vmem:[#allocation5 + $0x480] ss:$16 sps:$4 sm:$0xff]   ;;  %v4574_v6 = vld [vmem:[#allocation5 + $0x488] ss:$16 sps:$4 sm:$0xff]  }
  0xea   :  { %2652 = vmatpush1.bf16.msra.mxu0 %v4533_v23  ;;  %2816 = vmatpush1.bf16.msra.mxu1 %v4536_v24  ;;  %v648_v18 = vadd.f32 %v647_v5, %v646_v60  ;;  %v594_v8 = vadd.f32 %v593_v7, %v592_v12  ;;  %v1162_v23 = vunpack.c.l.b16 %v670_v10  ;;  %v250_v1 = vrot.slane %v249_v62, 1 }
  0xeb   :  { %2662 = vmatprep.subr.bf16.mxu0 %v4549_v31  ;;  %2826 = vmatprep.subr.bf16.mxu1 %v4552_v32  ;;  %v1186_v29 = vunpack.c.l.b16 %v694_v22  ;;  %v4567_v31 = vld [vmem:[#allocation5 + $0x464] ss:$16 sps:$4 sm:$0xff]   ;;  %v1194_v33 = vunpack.c.l.b16 %v702_v25  ;;  %v525_v5 = vsel %vm216_vm0, %v5291_v49, 0.0 }
  0xec   :  { %v649_v24 = vrot.slane %v648_v18, 1  ;;  %v718_v9 = vpack.c.bf16 %v594_v8, %v594_v8  ;;  %v1263_v35 = vsel %vm1221_vm1, %v1170_v27, %v1162_v23  ;;  %v251_v10 = vadd.f32 %v250_v1, %v249_v62 }
  0xed   :  { %2654 = vmatmul.mubr.bf16.vlgmr.msra.gmra.mrb[0].mxu0 %v5278_v14  ;;  %2818 = vmatmul.mubr.bf16.vlgmr.msra.gmra.mrb[0].mxu1 %v5278_v14  ;;  %v686_v14 = vpack.c.bf16 %v370_v3, %v370_v3  ;;  %v526_v20 = vrot.slane %v525_v5, 4 }
  0xee   :  { %2663 = vmatpush1.bf16.msra.mxu0 %v4547_v40  ;;  %2827 = vmatpush1.bf16.msra.mxu1 %v4550_v51  ;;  %v650_v32 = vadd.f32 %v649_v24, %v648_v18  ;;  %v1210_v37 = vunpack.c.l.b16 %v718_v9  ;;  %v303_v51 = vadd.f32 %v302_v13, %v301_v57  ;;  %v471_v18 = vadd.f32 %v470_v4, %v469_v44 }
  0xef   :  { %2664 = vmatprep.subr.bf16.mxu0 %v4555_v46  ;;  %2828 = vmatprep.subr.bf16.mxu1 %v4558_v61  ;;  %v1178_v63 = vunpack.c.l.b16 %v686_v14  ;;  %v358_v46 = vrot.slane %v357_v52, 4  ;;  %v414_v61 = vrot.slane %v413_v41, 4  ;;  %v581_v57 = vsel %vm216_vm0, %v5293_v50, 0.0 }
  0xf0   :  { %v726_v40 = vpack.c.bf16 %v650_v32, %v650_v32  ;;  %v304_v2 = vrot.slane %v303_v51, 2  ;;  %v582_v8 = vrot.slane %v581_v57, 4  ;;  %v637_v14 = vsel %vm216_vm0, %v5302_v53, 0.0  ;;  %v4585_v53 = vld [vmem:[#allocation5 + $0x4c4] ss:$16 sps:$4 sm:$0xff]  }
  0xf1   :  { %v1264_v38 = vsel %vm1223_vm2, %v1178_v63, %v1263_v35  ;;  %v359_v12 = vadd.f32 %v358_v46, %v357_v52  ;;  %v415_v3 = vadd.f32 %v414_v61, %v413_v41  ;;  %v472_v23 = vrot.slane %v471_v18, 2  ;;  %v4580_v63 = vld [vmem:[#allocation5 + $0x4a8] ss:$16 sps:$4 sm:$0xff]   ;;  %v4588_v32 = vld [vmem:[#allocation5 + $0x4cc] ss:$16 sps:$4 sm:$0xff]  }
  0xf2   :  { %2665 = vmatpush1.bf16.msra.mxu0 %v4553_v11  ;;  %2829 = vmatpush1.bf16.msra.mxu1 %v4556_v16  ;;  %v1265_v47 = vsel %vm1225_vm3, %v1186_v29, %v1264_v38  ;;  %v1218_v59 = vunpack.c.l.b16 %v726_v40  ;;  %v305_v48 = vadd.f32 %v304_v2, %v303_v51  ;;  %v4579_v16 = vld [vmem:[#allocation5 + $0x4a4] ss:$16 sps:$4 sm:$0xff]   ;;  %v527_v24 = vadd.f32 %v526_v20, %v525_v5  ;;  %v4583_v40 = vld [vmem:[#allocation5 + $0x4c0] ss:$16 sps:$4 sm:$0xff]  }
  0xf3   :  { %2666 = vmatprep.subr.bf16.mxu0 %v4561_v21  ;;  %2830 = vmatprep.subr.bf16.mxu1 %v4564_v58  ;;  %v1266_v55 = vsel %vm1227_vm4, %v1194_v33, %v1265_v47  ;;  %v360_v11 = vrot.slane %v359_v12, 2  ;;  %v416_v17 = vrot.slane %v415_v3, 2  ;;  %v4582_v21 = vld [vmem:[#allocation5 + $0x4ac] ss:$16 sps:$4 sm:$0xff]   ;;  %v638_v25 = vrot.slane %v637_v14, 4 }
  0xf4   :  { %v1267_v60 = vsel %vm1229_vm5, %v1202_v34, %v1266_v55  ;;  %v306_v58 = vrot.slane %v305_v48, 1  ;;  %v583_v9 = vadd.f32 %v582_v8, %v581_v57  ;;  %v669_v50 = vpack.c.bf16 %v251_v10, %v251_v10  ;;  %v4589_v2 = vld [vmem:[#allocation5 + $0x4e0] ss:$16 sps:$4 sm:$0xff]   ;;  %v4603_v20 = vld [vmem:[#allocation5 + $0x524] ss:$16 sps:$4 sm:$0xff]  }
  0xf5   :  { %v1268_v0 = vsel %vm1231_vm6, %v1210_v37, %v1267_v60  ;;  %v361_v49 = vadd.f32 %v360_v11, %v359_v12  ;;  %v417_v22 = vadd.f32 %v416_v17, %v415_v3  ;;  %v473_v43 = vadd.f32 %v472_v23, %v471_v18  ;;  %v4592_v3 = vld [vmem:[#allocation5 + $0x4e8] ss:$16 sps:$4 sm:$0xff]   ;;  %v4606_v57 = vld [vmem:[#allocation5 + $0x52c] ss:$16 sps:$4 sm:$0xff]  }
  0xf6   :  { %2667 = vmatpush1.bf16.msra.mxu0 %v4559_v28  ;;  %2831 = vmatpush1.bf16.msra.mxu1 %v4562_v30  ;;  %v1269_v19 = vsel %vm1233_vm7, %v1218_v59, %v1268_v0  ;;  %v307_v27 = vadd.f32 %v306_v58, %v305_v48  ;;  %v528_v30 = vrot.slane %v527_v24, 2  ;;  %v584_v34 = vrot.slane %v583_v9, 2  ;;  %v4598_v18 = vld [vmem:[#allocation5 + $0x508] ss:$16 sps:$4 sm:$0xff]   ;;  %v4612_v23 = vld [vmem:[#allocation5 + $0x54c] ss:$16 sps:$4 sm:$0xff]  }
  0xf7   :  { %2668 = vmatprep.subr.bf16.mxu0 %v4567_v31  ;;  %2832 = vmatprep.subr.bf16.mxu1 %v4570_v36  ;;  %v1289_v7 = vpack.c.b16 %v1269_v19, %v1269_v19  ;;  %v362_v28 = vrot.slane %v361_v49, 1  ;;  %v418_v29 = vrot.slane %v417_v22, 1  ;;  %v639_v31 = vadd.f32 %v638_v25, %v637_v14  ;;  %v4604_v8 = vld [vmem:[#allocation5 + $0x528] ss:$16 sps:$4 sm:$0xff]  }
  0xf8   :  { %v677_v35 = vpack.c.bf16 %v307_v27, %v307_v27  ;;  %v1161_v36 = vunpack.c.l.b16 %v669_v50  ;;  %v474_v38 = vrot.slane %v473_v43, 1  ;;  %v529_v39 = vadd.f32 %v528_v30, %v527_v24  ;;  %v91_v24 = vld [vmem:[#allocation2 + $0x18] sm:$0xff] }
  0xf9   :  { %2694 = vmatprep.mubr.bf16.mxu0 %v1289_v7  ;;  %2858 = vmatprep.mubr.bf16.mxu1 %v1289_v7  ;;  %v363_v33 = vadd.f32 %v362_v28, %v361_v49  ;;  %v419_v37 = vadd.f32 %v418_v29, %v417_v22  ;;  %v640_v13 = vrot.slane %v639_v31, 2  ;;  %v585_v47 = vadd.f32 %v584_v34, %v583_v9  ;;  %v4600_v7 = vld [vmem:[#allocation5 + $0x50c] ss:$16 sps:$4 sm:$0xff]   ;;  %v4601_v49 = vld [vmem:[#allocation5 + $0x520] ss:$16 sps:$4 sm:$0xff]  }
  0xfa   :  { %2669 = vmatpush1.bf16.msra.mxu0 %v4565_v42  ;;  %2833 = vmatpush1.bf16.msra.mxu1 %v4568_v15  ;;  %v1169_v41 = vunpack.c.l.b16 %v677_v35  ;;  %v4586_v42 = vld [vmem:[#allocation5 + $0x4c8] ss:$16 sps:$4 sm:$0xff]   ;;  %v475_v55 = vadd.f32 %v474_v38, %v473_v43  ;;  %v530_v62 = vrot.slane %v529_v39, 1  ;;  %v4591_v15 = vld [vmem:[#allocation5 + $0x4e4] ss:$16 sps:$4 sm:$0xff]  }
  0xfb   :  { %2670 = vmatprep.subr.bf16.mxu0 %v4573_v54  ;;  %2834 = vmatprep.subr.bf16.mxu1 %v4576_v45  ;;  %v685_v52 = vpack.c.bf16 %v363_v33, %v363_v33  ;;  %v641_v51 = vadd.f32 %v640_v13, %v639_v31  ;;  %v693_v46 = vpack.c.bf16 %v419_v37, %v419_v37  ;;  %v4594_v54 = vld [vmem:[#allocation5 + $0x4ec] ss:$16 sps:$4 sm:$0xff]   ;;  %v586_v59 = vrot.slane %v585_v47, 1  ;;  %v4609_v22 = vld [vmem:[#allocation5 + $0x544] ss:$16 sps:$4 sm:$0xff]  }
  0xfc   :  { %v1256_v61 = vsel %vm1221_vm1, %v1169_v41, %v1161_v36  ;;  %v531_v44 = vadd.f32 %v530_v62, %v529_v39  ;;  %v701_v0 = vpack.c.bf16 %v475_v55, %v475_v55  ;;  %v5351_v25 = vld [vmem:[#allocation2 + $0x38] sm:$0xff]  ;;  %v4607_v43 = vld [vmem:[#allocation5 + $0x540] ss:$16 sps:$4 sm:$0xff]   ;;  %v5379_v36 = vsel %vm216_vm0, %v91_v24, 0.0  ;;  %v4615_v37 = vld [vmem:[#allocation5 + $0x564] ss:$16 sps:$4 sm:$0xff]  }
  0xfd   :  { %v1177_v60 = vunpack.c.l.b16 %v685_v52  ;;  %v642_v45 = vrot.slane %v641_v51, 1  ;;  %v1185_v1 = vunpack.c.l.b16 %v693_v46  ;;  %v587_v12 = vadd.f32 %v586_v59, %v585_v47  ;;  %v5358_v28 = vld [vmem:[#allocation2 + $0x58] sm:$0xff] }
  0xfe   :  { %2671 = vmatpush1.bf16.msra.mxu0 %v4571_v56  ;;  %2835 = vmatpush1.bf16.msra.mxu1 %v4574_v6  ;;  %v709_v4 = vpack.c.bf16 %v531_v44, %v531_v44  ;;  %v1193_v5 = vunpack.c.l.b16 %v701_v0  ;;  %v4597_v6 = vld [vmem:[#allocation5 + $0x504] ss:$16 sps:$4 sm:$0xff]   ;;  %v5360_v9 = vld [vmem:[#allocation2 + $0x78] sm:$0xff]  ;;  %v159_v29 = vcombine.high %v5351_v25, %v5351_v25  ;;  %v163_v33 = vcombine.high %v5358_v28, %v5358_v28  ;;  %v4613_v44 = vld [vmem:[#allocation5 + $0x560] ss:$16 sps:$4 sm:$0xff]  }
  0xff   :  { %2672 = vmatprep.subr.bf16.mxu0 %v4579_v16  ;;  %2836 = vmatprep.subr.bf16.mxu1 %v4582_v21  ;;  %v1257_v19 = vsel %vm1223_vm2, %v1177_v60, %v1256_v61  ;;  %v643_v10 = vadd.f32 %v642_v45, %v641_v51  ;;  %v717_v48 = vpack.c.bf16 %v587_v12, %v587_v12  ;;  %v4595_v16 = vld [vmem:[#allocation5 + $0x500] ss:$16 sps:$4 sm:$0xff]   ;;  %v5362_v50 = vld [vmem:[#allocation2 + $0x98] sm:$0xff] }
 0x100   :  { %v1258_v56 = vsel %vm1225_vm3, %v1185_v1, %v1257_v19  ;;  %v1201_v11 = vunpack.c.l.b16 %v709_v4  ;;  %v4610_v30 = vld [vmem:[#allocation5 + $0x548] ss:$16 sps:$4 sm:$0xff]   ;;  %v167_v34 = vcombine.high %v5360_v9, %v5360_v9  ;;  %v171_v35 = vcombine.high %v5362_v50, %v5362_v50  ;;  %v4618_v47 = vld [vmem:[#allocation5 + $0x56c] ss:$16 sps:$4 sm:$0xff]   ;;  %v4621_v19 = vld [vmem:[#allocation5 + $0x584] ss:$16 sps:$4 sm:$0xff]  }
 0x101   :  { %v1259_v17 = vsel %vm1227_vm4, %v1193_v5, %v1258_v56  ;;  %v725_v21 = vpack.c.bf16 %v643_v10, %v643_v10  ;;  %v1209_v58 = vunpack.c.l.b16 %v717_v48  ;;  %v5366_v31 = vld [vmem:[#allocation2 + $0xb8] sm:$0xff]  ;;  %v322_v41 = vsel %vm216_vm0, %v159_v29, 0.0 }
 0x102   :  { %2673 = vmatpush1.bf16.msra.mxu0 %v4577_v26  ;;  %2837 = vmatpush1.bf16.msra.mxu1 %v4580_v63  ;;  %v1260_v14 = vsel %vm1229_vm5, %v1201_v11, %v1259_v17  ;;  %v155_v63 = vcombine.high %v91_v24, %v91_v24  ;;  %v175_v38 = vcombine.high %v5366_v31, %v5366_v31  ;;  %v434_v55 = vsel %vm216_vm0, %v167_v34, 0.0  ;;  %v4616_v45 = vld [vmem:[#allocation5 + $0x568] ss:$16 sps:$4 sm:$0xff]  }
 0x103   :  { %2674 = vmatprep.subr.bf16.mxu0 %v4585_v53  ;;  %2838 = vmatprep.subr.bf16.mxu1 %v4588_v32  ;;  %v5353_v26 = vunpack.c.l.b16 %v725_v21  ;;  %v5356_v27 = vsel %vm1231_vm6, %v1209_v58, %v1260_v14  ;;  %v5368_v53 = vld [vmem:[#allocation2 + $0xd8] sm:$0xff]  ;;  %v323_v62 = vrot.slane %v322_v41, 4  ;;  %v435_v46 = vrot.slane %v434_v55, 4 }
 0x104   :  { %v5370_v32 = vld [vmem:[#allocation2 + $0xf8] sm:$0xff]  ;;  %v179_v39 = vcombine.high %v5368_v53, %v5368_v53  ;;  %v546_v60 = vsel %vm216_vm0, %v175_v38, 0.0 }
 0x105   :  { %v183_v13 = vcombine.high %v5370_v32, %v5370_v32  ;;  %v324_v0 = vadd.f32 %v323_v62, %v322_v41  ;;  %v547_v12 = vrot.slane %v546_v60, 4  ;;  %v4622_v21 = vld [vmem:[#allocation5 + $0x588] ss:$16 sps:$4 sm:$0xff]  }
 0x106   :  { %2675 = vmatpush1.bf16.msra.mxu0 %v4583_v40  ;;  %2839 = vmatpush1.bf16.msra.mxu1 %v4586_v42  ;;  %v266_v40 = vsel %vm216_vm0, %v155_v63, 0.0  ;;  %v378_v42 = vsel %vm216_vm0, %v163_v33, 0.0  ;;  %v602_v61 = vsel %vm216_vm0, %v179_v39, 0.0 }
 0x107   :  { %2676 = vmatprep.subr.bf16.mxu0 %v4591_v15  ;;  %2840 = vmatprep.subr.bf16.mxu1 %v4594_v54  ;;  %v267_v52 = vrot.slane %v266_v40, 4  ;;  %v379_v51 = vrot.slane %v378_v42, 4  ;;  %v490_v15 = vsel %vm216_vm0, %v171_v35, 0.0  ;;  %v603_v5 = vrot.slane %v602_v61, 4 }
 0x108   :  { %v491_v59 = vrot.slane %v490_v15, 4  ;;  %v658_v56 = vsel %vm216_vm0, %v183_v13, 0.0  ;;  %v548_v11 = vadd.f32 %v547_v12, %v546_v60 }
 0x109   :  { %v268_v54 = vadd.f32 %v267_v52, %v266_v40  ;;  %v380_v1 = vadd.f32 %v379_v51, %v378_v42  ;;  %v4625_v40 = vld [vmem:[#allocation5 + $0x5a0] ss:$16 sps:$4 sm:$0xff]  }
 0x10a   :  { %2677 = vmatpush1.bf16.msra.mxu0 %v4589_v2  ;;  %2841 = vmatpush1.bf16.msra.mxu1 %v4592_v3  ;;  %v436_v2 = vadd.f32 %v435_v46, %v434_v55  ;;  %v492_v4 = vadd.f32 %v491_v59, %v490_v15  ;;  %v549_v14 = vrot.slane %v548_v11, 2  ;;  %v4628_v55 = vld [vmem:[#allocation5 + $0x5a8] ss:$16 sps:$4 sm:$0xff]   ;;  %v4636_v59 = vld [vmem:[#allocation5 + $0x5cc] ss:$16 sps:$4 sm:$0xff]  }
 0x10b   :  { %2678 = vmatprep.subr.bf16.mxu0 %v4597_v6  ;;  %2842 = vmatprep.subr.bf16.mxu1 %v4600_v7  ;;  %v269_v3 = vrot.slane %v268_v54, 2  ;;  %v4624_v6 = vld [vmem:[#allocation5 + $0x58c] ss:$16 sps:$4 sm:$0xff]   ;;  %v325_v7 = vrot.slane %v324_v0, 2  ;;  %v381_v10 = vrot.slane %v380_v1, 2 }
 0x10c   :  { %v437_v48 = vrot.slane %v436_v2, 2  ;;  %v493_v17 = vrot.slane %v492_v4, 2  ;;  %v550_v35 = vadd.f32 %v549_v14, %v548_v11  ;;  %v371_v14 = vsel %vm216_vm0, %v5358_v28, 0.0 }
 0x10d   :  { %v326_v58 = vadd.f32 %v325_v7, %v324_v0  ;;  %v4631_v0 = vld [vmem:[#allocation5 + $0x5c0] ss:$16 sps:$4 sm:$0xff]   ;;  %v4639_v7 = vld [vmem:[#allocation5 + $0x5e4] ss:$16 sps:$4 sm:$0xff]   ;;  %v483_v28 = vsel %vm216_vm0, %v5362_v50, 0.0 }
 0x10e   :  { %2679 = vmatpush1.bf16.msra.mxu0 %v4595_v16  ;;  %2843 = vmatpush1.bf16.msra.mxu1 %v4598_v18  ;;  %v270_v16 = vadd.f32 %v269_v3, %v268_v54  ;;  %v604_v18 = vadd.f32 %v603_v5, %v602_v61  ;;  %v494_v24 = vadd.f32 %v493_v17, %v492_v4  ;;  %v551_v42 = vrot.slane %v550_v35, 1  ;;  %v4633_v54 = vld [vmem:[#allocation5 + $0x5c4] ss:$16 sps:$4 sm:$0xff]   ;;  %v4634_v3 = vld [vmem:[#allocation5 + $0x5c8] ss:$16 sps:$4 sm:$0xff]  }
 0x10f   :  { %2680 = vmatprep.subr.bf16.mxu0 %v4603_v20  ;;  %2844 = vmatprep.subr.bf16.mxu1 %v4606_v57  ;;  %v659_v20 = vrot.slane %v658_v56, 4  ;;  %v4619_v57 = vld [vmem:[#allocation5 + $0x580] ss:$16 sps:$4 sm:$0xff]  }
 0x110   :  { %v605_v63 = vrot.slane %v604_v18, 2  ;;  %v495_v38 = vrot.slane %v494_v24, 1  ;;  %v552_v60 = vadd.f32 %v551_v42, %v550_v35 }
 0x111   :  { %v660_v29 = vadd.f32 %v659_v20, %v658_v56  ;;  %v260_v20 = vrot.slane %v5379_v36, 4 }
 0x112   :  { %2681 = vmatpush1.bf16.msra.mxu0 %v4601_v49  ;;  %2845 = vmatpush1.bf16.msra.mxu1 %v4604_v8  ;;  %v382_v49 = vadd.f32 %v381_v10, %v380_v1  ;;  %v438_v8 = vadd.f32 %v437_v48, %v436_v2  ;;  %v606_v39 = vadd.f32 %v605_v63, %v604_v18  ;;  %v4640_v63 = vld [vmem:[#allocation5 + $0x5e8] ss:$16 sps:$4 sm:$0xff]  }
 0x113   :  { %2682 = vmatprep.subr.bf16.mxu0 %v4609_v22  ;;  %2846 = vmatprep.subr.bf16.mxu1 %v4612_v23  ;;  %v4627_v22 = vld [vmem:[#allocation5 + $0x5a4] ss:$16 sps:$4 sm:$0xff]   ;;  %v271_v23 = vrot.slane %v270_v16, 1  ;;  %v661_v13 = vrot.slane %v660_v29, 2  ;;  %v496_v62 = vadd.f32 %v495_v38, %v494_v24  ;;  %v712_v4 = vpack.c.bf16 %v552_v60, %v552_v60  ;;  %v4651_v38 = vld [vmem:[#allocation5 + $0x600] ss:$16 sps:$4 sm:$0xff]  }
 0x114   :  { %v383_v33 = vrot.slane %v382_v49, 1  ;;  %v439_v34 = vrot.slane %v438_v8, 1  ;;  %v607_v51 = vrot.slane %v606_v39, 1  ;;  %v372_v24 = vrot.slane %v371_v14, 4 }
 0x115   :  { %v662_v46 = vadd.f32 %v661_v13, %v660_v29  ;;  %v1204_v17 = vunpack.c.l.b16 %v712_v4  ;;  %v4653_v29 = vld [vmem:[#allocation5 + $0x604] ss:$16 sps:$4 sm:$0xff]   ;;  %v4666_v4 = vld [vmem:[#allocation5 + $0x648] ss:$16 sps:$4 sm:$0xff]  }
 0x116   :  { %2683 = vmatpush1.bf16.msra.mxu0 %v4607_v43  ;;  %2847 = vmatpush1.bf16.msra.mxu1 %v4610_v30  ;;  %v4630_v43 = vld [vmem:[#allocation5 + $0x5ac] ss:$16 sps:$4 sm:$0xff]   ;;  %v327_v30 = vrot.slane %v326_v58, 1  ;;  %v384_v52 = vadd.f32 %v383_v33, %v382_v49  ;;  %v440_v41 = vadd.f32 %v439_v34, %v438_v8  ;;  %v608_v1 = vadd.f32 %v607_v51, %v606_v39  ;;  %v4654_v39 = vld [vmem:[#allocation5 + $0x608] ss:$16 sps:$4 sm:$0xff]  }
 0x117   :  { %2684 = vmatprep.subr.bf16.mxu0 %v4615_v37  ;;  %2848 = vmatprep.subr.bf16.mxu1 %v4618_v47  ;;  %v272_v37 = vadd.f32 %v271_v23, %v270_v16  ;;  %v663_v2 = vrot.slane %v662_v46, 1  ;;  %v427_v33 = vsel %vm216_vm0, %v5360_v9, 0.0  ;;  %v4656_v34 = vld [vmem:[#allocation5 + $0x60c] ss:$16 sps:$4 sm:$0xff]   ;;  %v4659_v9 = vld [vmem:[#allocation5 + $0x624] ss:$16 sps:$4 sm:$0xff]  }
 0x118   :  { %v328_v47 = vadd.f32 %v327_v30, %v326_v58  ;;  %v696_v12 = vpack.c.bf16 %v440_v41, %v440_v41  ;;  %v720_v48 = vpack.c.bf16 %v608_v1, %v608_v1  ;;  %v4662_v41 = vld [vmem:[#allocation5 + $0x62c] ss:$16 sps:$4 sm:$0xff]   ;;  %v651_v1 = vsel %vm216_vm0, %v5370_v32, 0.0 }
 0x119   :  { %v672_v15 = vpack.c.bf16 %v272_v37, %v272_v37  ;;  %v664_v10 = vadd.f32 %v663_v2, %v662_v46  ;;  %v428_v37 = vrot.slane %v427_v33, 4  ;;  %v4657_v46 = vld [vmem:[#allocation5 + $0x620] ss:$16 sps:$4 sm:$0xff]   ;;  %v4674_v32 = vld [vmem:[#allocation5 + $0x66c] ss:$16 sps:$4 sm:$0xff]  }
 0x11a   :  { %2685 = vmatpush1.bf16.msra.mxu0 %v4613_v44  ;;  %2849 = vmatpush1.bf16.msra.mxu1 %v4616_v45  ;;  %v680_v61 = vpack.c.bf16 %v328_v47, %v328_v47  ;;  %v688_v44 = vpack.c.bf16 %v384_v52, %v384_v52  ;;  %v315_v45 = vsel %vm216_vm0, %v5351_v25, 0.0  ;;  %v1188_v11 = vunpack.c.l.b16 %v696_v12  ;;  %v4642_v25 = vld [vmem:[#allocation5 + $0x5ec] ss:$16 sps:$4 sm:$0xff]  }
 0x11b   :  { %2686 = vmatprep.subr.bf16.mxu0 %v4621_v19  ;;  %2850 = vmatprep.subr.bf16.mxu1 %v4624_v6  ;;  %v704_v19 = vpack.c.bf16 %v496_v62, %v496_v62  ;;  %v1164_v5 = vunpack.c.l.b16 %v672_v15  ;;  %v728_v58 = vpack.c.bf16 %v664_v10, %v664_v10  ;;  %v1212_v49 = vunpack.c.l.b16 %v720_v48  ;;  %v4660_v15 = vld [vmem:[#allocation5 + $0x628] ss:$16 sps:$4 sm:$0xff]  }
 0x11c   :  { %v1172_v56 = vunpack.c.l.b16 %v680_v61  ;;  %v1180_v6 = vunpack.c.l.b16 %v688_v44  ;;  %v484_v47 = vrot.slane %v483_v28, 4  ;;  %v429_v42 = vadd.f32 %v428_v37, %v427_v33  ;;  %v4665_v44 = vld [vmem:[#allocation5 + $0x644] ss:$16 sps:$4 sm:$0xff]   ;;  %v4693_v37 = vld [vmem:[#allocation5 + $0x6e0] ss:$16 sps:$4 sm:$0xff]  }
 0x11d   :  { %v1196_v16 = vunpack.c.l.b16 %v704_v19  ;;  %v595_v61 = vsel %vm216_vm0, %v5368_v53, 0.0  ;;  %v4663_v53 = vld [vmem:[#allocation5 + $0x640] ss:$16 sps:$4 sm:$0xff]   ;;  %v4689_v33 = vld [vmem:[#allocation5 + $0x6c4] ss:$16 sps:$4 sm:$0xff]  }
 0x11e   :  { %2687 = vmatpush1.bf16.msra.mxu0 %v4619_v57  ;;  %2851 = vmatpush1.bf16.msra.mxu1 %v4622_v21  ;;  %v1277_v18 = vsel %vm1221_vm1, %v1172_v56, %v1164_v5  ;;  %v316_v57 = vrot.slane %v315_v45, 4  ;;  %v4637_v21 = vld [vmem:[#allocation5 + $0x5e0] ss:$16 sps:$4 sm:$0xff]   ;;  %v596_v19 = vrot.slane %v595_v61, 4 }
 0x11f   :  { %2688 = vmatprep.subr.bf16.mxu0 %v4627_v22  ;;  %2852 = vmatprep.subr.bf16.mxu1 %v4630_v43  ;;  %v1278_v8 = vsel %vm1223_vm2, %v1180_v6, %v1277_v18  ;;  %v1262_v22 = vsel %vm1233_vm7, %v5353_v26, %v5356_v27  ;;  %v1220_v43 = vunpack.c.l.b16 %v728_v58  ;;  %v261_v27 = vadd.f32 %v260_v20, %v5379_v36  ;;  %v4671_v6 = vld [vmem:[#allocation5 + $0x664] ss:$16 sps:$4 sm:$0xff]   ;;  %v4672_v18 = vld [vmem:[#allocation5 + $0x668] ss:$16 sps:$4 sm:$0xff]   ;;  %v4680_v58 = vld [vmem:[#allocation5 + $0x68c] ss:$16 sps:$4 sm:$0xff]  }
 0x120   :  { %v1279_v23 = vsel %vm1225_vm3, %v1188_v11, %v1278_v8  ;;  %v317_v35 = vadd.f32 %v316_v57, %v315_v45  ;;  %v1288_v52 = vpack.c.b16 %v1262_v22, %v1262_v22  ;;  %v485_v36 = vadd.f32 %v484_v47, %v483_v28  ;;  %v4668_v45 = vld [vmem:[#allocation5 + $0x64c] ss:$16 sps:$4 sm:$0xff]   ;;  %v4702_v47 = vld [vmem:[#allocation5 + $0x708] ss:$16 sps:$4 sm:$0xff]  }
 0x121   :  { %v1280_v30 = vsel %vm1227_vm4, %v1196_v16, %v1279_v23  ;;  %v262_v62 = vrot.slane %v261_v27, 2  ;;  %v5435_v16 = vadd.f32 %v596_v19, %v595_v61  ;;  %v4675_v23 = vld [vmem:[#allocation5 + $0x680] ss:$16 sps:$4 sm:$0xff]   ;;  %v4692_v28 = vld [vmem:[#allocation5 + $0x6cc] ss:$16 sps:$4 sm:$0xff]  }
 0x122   :  { %2689 = vmatpush1.bf16.msra.mxu0 %v4625_v40  ;;  %2853 = vmatpush1.bf16.msra.mxu1 %v4628_v55  ;;  %v1281_v26 = vsel %vm1229_vm5, %v1204_v17, %v1280_v30  ;;  %v373_v40 = vadd.f32 %v372_v24, %v371_v14  ;;  %v539_v55 = vsel %vm216_vm0, %v5366_v31, 0.0  ;;  %v318_v51 = vrot.slane %v317_v35, 2  ;;  %v4669_v17 = vld [vmem:[#allocation5 + $0x660] ss:$16 sps:$4 sm:$0xff]   ;;  %v4678_v24 = vld [vmem:[#allocation5 + $0x688] ss:$16 sps:$4 sm:$0xff]  }
 0x123   :  { %2690 = vmatprep.subr.bf16.mxu0 %v4633_v54  ;;  %2854 = vmatprep.subr.bf16.mxu1 %v4636_v59  ;;  %v1282_v13 = vsel %vm1231_vm6, %v1212_v49, %v1281_v26  ;;  %v540_v60 = vrot.slane %v539_v55, 4  ;;  %v430_v31 = vrot.slane %v429_v42, 2  ;;  %v5421_v2 = vadd.f32 %v262_v62, %v261_v27  ;;  %v4684_v30 = vld [vmem:[#allocation5 + $0x6a8] ss:$16 sps:$4 sm:$0xff]   ;;  %v4695_v27 = vld [vmem:[#allocation5 + $0x6e4] ss:$16 sps:$4 sm:$0xff]  }
 0x124   :  { %v1283_v50 = vsel %vm1233_vm7, %v1220_v43, %v1282_v13  ;;  %v374_v59 = vrot.slane %v373_v40, 2  ;;  %v5423_v12 = vadd.f32 %v318_v51, %v317_v35  ;;  %v598_v14 = vrot.slane %v5435_v16, 2  ;;  %v4681_v43 = vld [vmem:[#allocation5 + $0x6a0] ss:$16 sps:$4 sm:$0xff]   ;;  %v4690_v26 = vld [vmem:[#allocation5 + $0x6c8] ss:$16 sps:$4 sm:$0xff]  }
 0x125   :  { %v1291_v54 = vpack.c.b16 %v1283_v50, %v1283_v50  ;;  %v5427_v56 = vadd.f32 %v540_v60, %v539_v55  ;;  %v264_v48 = vrot.slane %v5421_v2, 1  ;;  %v4698_v35 = vld [vmem:[#allocation5 + $0x6ec] ss:$16 sps:$4 sm:$0xff]   ;;  %v4705_v55 = vld [vmem:[#allocation5 + $0x720] ss:$16 sps:$4 sm:$0xff]  }
 0x126   :  { %2691 = vmatpush1.bf16.msra.mxu0 %v4631_v0  ;;  %2855 = vmatpush1.bf16.msra.mxu1 %v4634_v3  ;;  %v486_v0 = vrot.slane %v485_v36, 2  ;;  %v652_v3 = vrot.slane %v651_v1, 4  ;;  %v5425_v5 = vadd.f32 %v374_v59, %v373_v40  ;;  %v320_v11 = vrot.slane %v5423_v12, 1  ;;  %v4704_v13 = vld [vmem:[#allocation5 + $0x70c] ss:$16 sps:$4 sm:$0xff]  }
 0x127   :  { %2692 = vmatprep.subr.bf16.mxu0 %v4639_v7  ;;  %2856 = vmatprep.subr.bf16.mxu1 %v4642_v25  ;;  %v5429_v7 = vadd.f32 %v430_v31, %v429_v42  ;;  %v542_v57 = vrot.slane %v5427_v56, 2  ;;  %v4699_v40 = vld [vmem:[#allocation5 + $0x700] ss:$16 sps:$4 sm:$0xff]   ;;  %v4710_v50 = vld [vmem:[#allocation5 + $0x72c] ss:$16 sps:$4 sm:$0xff]   ;;  %v599_v60 = vadd.f32 %v598_v14, %v5435_v16 }
 0x128   :  { %v5431_v10 = vadd.f32 %v486_v0, %v485_v36  ;;  %v5437_v25 = vadd.f32 %v652_v3, %v651_v1  ;;  %v376_v20 = vrot.slane %v5425_v5, 1  ;;  %v4708_v36 = vld [vmem:[#allocation5 + $0x728] ss:$16 sps:$4 sm:$0xff]   ;;  %v4716_v59 = vld [vmem:[#allocation5 + $0x74c] ss:$16 sps:$4 sm:$0xff]  }
 0x129   :  { %v432_v49 = vrot.slane %v5429_v7, 1  ;;  %v543_v62 = vadd.f32 %v542_v57, %v5427_v56  ;;  %v4711_v1 = vld [vmem:[#allocation5 + $0x740] ss:$16 sps:$4 sm:$0xff]   ;;  %v4719_v3 = vld [vmem:[#allocation5 + $0x764] ss:$16 sps:$4 sm:$0xff]  }
 0x12a   :  { %2693 = vmatpush1.bf16.msra.mxu0 %v4637_v21  ;;  %2857 = vmatpush1.bf16.msra.mxu1 %v4640_v63  ;;  %v4677_v21 = vld [vmem:[#allocation5 + $0x684] ss:$16 sps:$4 sm:$0xff]   ;;  %v488_v8 = vrot.slane %v5431_v10, 1  ;;  %v654_v22 = vrot.slane %v5437_v25, 2  ;;  %v377_v42 = vadd.f32 %v376_v20, %v5425_v5 }
 0x12b   :  { %2703 = vmatprep.subr.bf16.mxu0 %v4653_v29  ;;  %2867 = vmatprep.subr.bf16.mxu1 %v4656_v34  ;;  %v4683_v63 = vld [vmem:[#allocation5 + $0x6a4] ss:$16 sps:$4 sm:$0xff]   ;;  %v4686_v29 = vld [vmem:[#allocation5 + $0x6ac] ss:$16 sps:$4 sm:$0xff]   ;;  %v4687_v34 = vld [vmem:[#allocation5 + $0x6c0] ss:$16 sps:$4 sm:$0xff]  }
 0x12c   :  { %v687_v61 = vpack.c.bf16 %v377_v42, %v377_v42  ;;  %v489_v0 = vadd.f32 %v488_v8, %v5431_v10  ;;  %v4720_v10 = vld [vmem:[#allocation5 + $0x768] ss:$16 sps:$4 sm:$0xff]   ;;  %v4725_v16 = vld [vmem:[#allocation5 + $0x784] ss:$16 sps:$4 sm:$0xff]  }
 0x12d   :  { %2695 = vmatmul.mubr.bf16.vlgmr.msra.gmra.mrb[0].mxu0 %v1288_v52  ;;  %2859 = vmatmul.mubr.bf16.vlgmr.msra.gmra.mrb[0].mxu1 %v1288_v52  ;;  %v265_v52 = vadd.f32 %v264_v48, %v5421_v2  ;;  %v4714_v2 = vld [vmem:[#allocation5 + $0x748] ss:$16 sps:$4 sm:$0xff]   ;;  %v4731_v14 = vld [vmem:[#allocation5 + $0x7a4] ss:$16 sps:$4 sm:$0xff]  }
 0x12e   :  { %2704 = vmatpush1.bf16.msra.mxu0 %v4651_v38  ;;  %2868 = vmatpush1.bf16.msra.mxu1 %v4654_v39  ;;  %v4696_v38 = vld [vmem:[#allocation5 + $0x6e8] ss:$16 sps:$4 sm:$0xff]   ;;  %v4701_v39 = vld [vmem:[#allocation5 + $0x704] ss:$16 sps:$4 sm:$0xff]   ;;  %v1179_v5 = vunpack.c.l.b16 %v687_v61 }
 0x12f   :  { %2705 = vmatprep.subr.bf16.mxu0 %v4659_v9  ;;  %2869 = vmatprep.subr.bf16.mxu1 %v4662_v41  ;;  %v321_v9 = vadd.f32 %v320_v11, %v5423_v12  ;;  %v4707_v41 = vld [vmem:[#allocation5 + $0x724] ss:$16 sps:$4 sm:$0xff]   ;;  %v671_v51 = vpack.c.bf16 %v265_v52, %v265_v52  ;;  %v655_v12 = vadd.f32 %v654_v22, %v5437_v25  ;;  %v4728_v25 = vld [vmem:[#allocation5 + $0x78c] ss:$16 sps:$4 sm:$0xff]  }
 0x130   :  { %2735 = vmatprep.mubr.bf16.mxu0 %v1291_v54  ;;  %2899 = vmatprep.mubr.bf16.mxu1 %v1291_v54  ;;  %v4713_v54 = vld [vmem:[#allocation5 + $0x744] ss:$16 sps:$4 sm:$0xff]   ;;  %v4734_v22 = vld [vmem:[#allocation5 + $0x7ac] ss:$16 sps:$4 sm:$0xff]  }
 0x131   :  { %v656_v48 = vrot.slane %v655_v12, 1  ;;  %v4760_v42 = vld [vmem:[#allocation7 + $0x14] ss:$8 sps:$4 sm:$0xff]   ;;  %v4775_v61 = vld [vmem:[#allocation7 + $0x64] ss:$8 sps:$4 sm:$0xff]  }
 0x132   :  { %2706 = vmatpush1.bf16.msra.mxu0 %v4657_v46  ;;  %2870 = vmatpush1.bf16.msra.mxu1 %v4660_v15  ;;  %v679_v46 = vpack.c.bf16 %v321_v9, %v321_v9  ;;  %v433_v15 = vadd.f32 %v432_v49, %v5429_v7  ;;  %v4717_v7 = vld [vmem:[#allocation5 + $0x760] ss:$16 sps:$4 sm:$0xff]   ;;  %v4757_v9 = vld [vmem:[#allocation7 + $0x4] ss:$8 sps:$4 sm:$0xff]  }
 0x133   :  { %2707 = vmatprep.subr.bf16.mxu0 %v4665_v44  ;;  %2871 = vmatprep.subr.bf16.mxu1 %v4668_v45  ;;  %v544_v44 = vrot.slane %v543_v62, 1  ;;  %v1163_v45 = vunpack.c.l.b16 %v671_v51  ;;  %v657_v49 = vadd.f32 %v656_v48, %v655_v12  ;;  %v4766_v51 = vld [vmem:[#allocation7 + $0x34] ss:$8 sps:$4 sm:$0xff]   ;;  %v4782_v12 = vld [vmem:[#allocation7 + $0x90] ss:$8 sps:$4 sm:$0xff]  }
 0x134   :  { %v1171_v31 = vunpack.c.l.b16 %v679_v46  ;;  %v695_v19 = vpack.c.bf16 %v433_v15, %v433_v15  ;;  %v4764_v46 = vld [vmem:[#allocation7 + $0x30] ss:$8 sps:$4 sm:$0xff]   ;;  %v4769_v15 = vld [vmem:[#allocation7 + $0x44] ss:$8 sps:$4 sm:$0xff]   ;;  %v4802_v48 = vld [vmem:[#allocation7 + $0xf4] ss:$8 sps:$4 sm:$0xff]  }
 0x135   :  { %v545_v56 = vadd.f32 %v544_v44, %v543_v62  ;;  %v4761_v62 = vld [vmem:[#allocation7 + $0x20] ss:$8 sps:$4 sm:$0xff]  }
 0x136   :  { %2708 = vmatpush1.bf16.msra.mxu0 %v4663_v53  ;;  %2872 = vmatpush1.bf16.msra.mxu1 %v4666_v4  ;;  %v4722_v53 = vld [vmem:[#allocation5 + $0x76c] ss:$16 sps:$4 sm:$0xff]   ;;  %v600_v4 = vrot.slane %v599_v60, 1  ;;  %v1187_v11 = vunpack.c.l.b16 %v695_v19  ;;  %v4773_v44 = vld [vmem:[#allocation7 + $0x60] ss:$8 sps:$4 sm:$0xff]  }
 0x137   :  { %2709 = vmatprep.subr.bf16.mxu0 %v4671_v6  ;;  %2873 = vmatprep.subr.bf16.mxu1 %v4674_v32  ;;  %v1270_v6 = vsel %vm1221_vm1, %v1171_v31, %v1163_v45  ;;  %v703_v32 = vpack.c.bf16 %v489_v0, %v489_v0  ;;  %v711_v20 = vpack.c.bf16 %v545_v56, %v545_v56  ;;  %v4778_v45 = vld [vmem:[#allocation7 + $0x74] ss:$8 sps:$4 sm:$0xff]   ;;  %v4776_v31 = vld [vmem:[#allocation7 + $0x70] ss:$8 sps:$4 sm:$0xff]   ;;  %v4781_v0 = vld [vmem:[#allocation7 + $0x84] ss:$8 sps:$4 sm:$0xff]  }
 0x138   :  { %v4787_v19 = vld [vmem:[#allocation7 + $0xa4] ss:$8 sps:$4 sm:$0xff]   ;;  %v4791_v56 = vld [vmem:[#allocation7 + $0xc0] ss:$8 sps:$4 sm:$0xff]  }
 0x139   :  { %v1195_v57 = vunpack.c.l.b16 %v703_v32  ;;  %v4794_v32 = vld [vmem:[#allocation7 + $0xd0] ss:$8 sps:$4 sm:$0xff]  }
 0x13a   :  { %2710 = vmatpush1.bf16.msra.mxu0 %v4669_v17  ;;  %2874 = vmatpush1.bf16.msra.mxu1 %v4672_v18  ;;  %v601_v17 = vadd.f32 %v600_v4, %v599_v60  ;;  %v1271_v18 = vsel %vm1223_vm2, %v1179_v5, %v1270_v6  ;;  %v4770_v60 = vld [vmem:[#allocation7 + $0x50] ss:$8 sps:$4 sm:$0xff]   ;;  %v4793_v5 = vld [vmem:[#allocation7 + $0xc4] ss:$8 sps:$4 sm:$0xff]   ;;  %v4796_v6 = vld [vmem:[#allocation7 + $0xd4] ss:$8 sps:$4 sm:$0xff]  }
 0x13b   :  { %2711 = vmatprep.subr.bf16.mxu0 %v4677_v21  ;;  %2875 = vmatprep.subr.bf16.mxu1 %v4680_v58  ;;  %v4723_v21 = vld [vmem:[#allocation5 + $0x780] ss:$16 sps:$4 sm:$0xff]   ;;  %v4726_v58 = vld [vmem:[#allocation5 + $0x788] ss:$16 sps:$4 sm:$0xff]   ;;  %v1272_v8 = vsel %vm1225_vm3, %v1187_v11, %v1271_v18 }
 0x13c   :  { %v4788_v4 = vld [vmem:[#allocation7 + $0xb0] ss:$8 sps:$4 sm:$0xff]   ;;  %v4853_v18 = vld [vmem:[#allocation8 + $0x48] sm:$0xff]  }
 0x13d   :  { %v4800_v11 = vld [vmem:[#allocation7 + $0xf0] ss:$8 sps:$4 sm:$0xff]  }
 0x13e   :  { %2712 = vmatpush1.bf16.msra.mxu0 %v4675_v23  ;;  %2876 = vmatpush1.bf16.msra.mxu1 %v4678_v24  ;;  %v719_v23 = vpack.c.bf16 %v601_v17, %v601_v17  ;;  %v1203_v24 = vunpack.c.l.b16 %v711_v20  ;;  %v4852_v17 = vld [vmem:[#allocation8] sm:$0xff]   ;;  %v4854_v20 = vld [vmem:[#allocation8 + $0x8] sm:$0xff]  }
 0x13f   :  { %2713 = vmatprep.subr.bf16.mxu0 %v4683_v63  ;;  %2877 = vmatprep.subr.bf16.mxu1 %v4686_v29  ;;  %v1273_v63 = vsel %vm1227_vm4, %v1195_v57, %v1272_v8  ;;  %v4729_v29 = vld [vmem:[#allocation5 + $0x7a0] ss:$16 sps:$4 sm:$0xff]  }
 0x140   :  { %v4855_v57 = vld [vmem:[#allocation8 + $0x50] sm:$0xff]   ;;  %v4859_v8 = vld [vmem:[#allocation8 + $0x60] sm:$0xff]  }
 0x142   :  { %2714 = vmatpush1.bf16.msra.mxu0 %v4681_v43  ;;  %2878 = vmatpush1.bf16.msra.mxu1 %v4684_v30  ;;  %v4732_v43 = vld [vmem:[#allocation5 + $0x7a8] ss:$16 sps:$4 sm:$0xff]   ;;  %v727_v30 = vpack.c.bf16 %v657_v49, %v657_v49 }
 0x143   :  { %2715 = vmatprep.subr.bf16.mxu0 %v4689_v33  ;;  %2879 = vmatprep.subr.bf16.mxu1 %v4692_v28  ;;  %v4737_v33 = vld [vmem:[#allocation5 + $0x7c4] ss:$16 sps:$4 sm:$0xff]   ;;  %v4740_v28 = vld [vmem:[#allocation5 + $0x7cc] ss:$16 sps:$4 sm:$0xff]  }
 0x144   :  { %v4858_v49 = vld [vmem:[#allocation8 + $0x18] sm:$0xff]  }
 0x146   :  { %2716 = vmatpush1.bf16.msra.mxu0 %v4687_v34  ;;  %2880 = vmatpush1.bf16.msra.mxu1 %v4690_v26  ;;  %v1211_v34 = vunpack.c.l.b16 %v719_v23  ;;  %v1274_v26 = vsel %vm1229_vm5, %v1203_v24, %v1273_v63  ;;  %v4862_v23 = vld [vmem:[#allocation8 + $0x28] sm:$0xff]   ;;  %v1073_v24 = vlaneseq }
 0x147   :  { %2717 = vmatprep.subr.bf16.mxu0 %v4695_v27  ;;  %2881 = vmatprep.subr.bf16.mxu1 %v4698_v35  ;;  %v4735_v27 = vld [vmem:[#allocation5 + $0x7c0] ss:$16 sps:$4 sm:$0xff]   ;;  %v4738_v35 = vld [vmem:[#allocation5 + $0x7c8] ss:$16 sps:$4 sm:$0xff]  }
 0x148   :  { %v5464_v63 = vshrl.u32 %v1073_v24, 7  ;;  %v4865_v24 = vld [vmem:[#allocation8 + $0x78] sm:$0xff]  }
 0x14a   :  { %2718 = vmatpush1.bf16.msra.mxu0 %v4693_v37  ;;  %2882 = vmatpush1.bf16.msra.mxu1 %v4696_v38  ;;  %v1219_v37 = vunpack.c.l.b16 %v727_v30  ;;  %v4743_v38 = vld [vmem:[#allocation5 + $0x7e4] ss:$16 sps:$4 sm:$0xff]   ;;  %v1079_v30 = vsub.s32 1, %v5464_v63 }
 0x14b   :  { %2719 = vmatprep.subr.bf16.mxu0 %v4701_v39  ;;  %2883 = vmatprep.subr.bf16.mxu1 %v4704_v13  ;;  %v4746_v39 = vld [vmem:[#allocation5 + $0x7ec] ss:$16 sps:$4 sm:$0xff]   ;;  %v1275_v13 = vsel %vm1231_vm6, %v1211_v34, %v1274_v26 }
 0x14c   :  { %v1276_v52 = vsel %vm1233_vm7, %v1219_v37, %v1275_v13 }
 0x14e   :  { %2720 = vmatpush1.bf16.msra.mxu0 %v4699_v40  ;;  %2884 = vmatpush1.bf16.msra.mxu1 %v4702_v47  ;;  %v4741_v40 = vld [vmem:[#allocation5 + $0x7e0] ss:$16 sps:$4 sm:$0xff]   ;;  %v4744_v47 = vld [vmem:[#allocation5 + $0x7e8] ss:$16 sps:$4 sm:$0xff]  }
 0x14f   :  { %2721 = vmatprep.subr.bf16.mxu0 %v4707_v41  ;;  %2885 = vmatprep.subr.bf16.mxu1 %v4710_v50  ;;  %v1290_v41 = vpack.c.b16 %v1276_v52, %v1276_v52  ;;  %v4755_v50 = vld [vmem:[#allocation7] ss:$8 sps:$4 sm:$0xff]  }
 0x152   :  { %2722 = vmatpush1.bf16.msra.mxu0 %v4705_v55  ;;  %2886 = vmatpush1.bf16.msra.mxu1 %v4708_v36  ;;  %v4758_v55 = vld [vmem:[#allocation7 + $0x10] ss:$8 sps:$4 sm:$0xff]   ;;  %v4763_v36 = vld [vmem:[#allocation7 + $0x24] ss:$8 sps:$4 sm:$0xff]  }
 0x153   :  { %2723 = vmatprep.subr.bf16.mxu0 %v4713_v54  ;;  %2887 = vmatprep.subr.bf16.mxu1 %v4716_v59  ;;  %v4767_v54 = vld [vmem:[#allocation7 + $0x40] ss:$8 sps:$4 sm:$0xff]   ;;  %v4772_v59 = vld [vmem:[#allocation7 + $0x54] ss:$8 sps:$4 sm:$0xff]  }
 0x156   :  { %2724 = vmatpush1.bf16.msra.mxu0 %v4711_v1  ;;  %2888 = vmatpush1.bf16.msra.mxu1 %v4714_v2  ;;  %v4779_v1 = vld [vmem:[#allocation7 + $0x80] ss:$8 sps:$4 sm:$0xff]   ;;  %v4784_v2 = vld [vmem:[#allocation7 + $0x94] ss:$8 sps:$4 sm:$0xff]  }
 0x157   :  { %2725 = vmatprep.subr.bf16.mxu0 %v4719_v3  ;;  %2889 = vmatprep.subr.bf16.mxu1 %v4722_v53  ;;  %v4785_v3 = vld [vmem:[#allocation7 + $0xa0] ss:$8 sps:$4 sm:$0xff]   ;;  %v4790_v53 = vld [vmem:[#allocation7 + $0xb4] ss:$8 sps:$4 sm:$0xff]  }
 0x15a   :  { %2726 = vmatpush1.bf16.msra.mxu0 %v4717_v7  ;;  %2890 = vmatpush1.bf16.msra.mxu1 %v4720_v10  ;;  %v4799_v7 = vld [vmem:[#allocation7 + $0xe4] ss:$8 sps:$4 sm:$0xff]   ;;  %v4797_v10 = vld [vmem:[#allocation7 + $0xe0] ss:$8 sps:$4 sm:$0xff]  }
 0x15b   :  { %2727 = vmatprep.subr.bf16.mxu0 %v4725_v16  ;;  %2891 = vmatprep.subr.bf16.mxu1 %v4728_v25  ;;  %v4805_v16 = vld [vmem:[#allocation7 + $0x104] ss:$8 sps:$4 sm:$0xff]  }
 0x15c   :  { %v4851_v25 = vld [vmem:[#allocation8 + $0x40] sm:$0xff]  }
 0x15e   :  { %2728 = vmatpush1.bf16.msra.mxu0 %v4723_v21  ;;  %2892 = vmatpush1.bf16.msra.mxu1 %v4726_v58  ;;  %v4856_v21 = vld [vmem:[#allocation8 + $0x10] sm:$0xff]   ;;  %v4857_v58 = vld [vmem:[#allocation8 + $0x58] sm:$0xff]  }
 0x15f   :  { %2729 = vmatprep.subr.bf16.mxu0 %v4731_v14  ;;  %2893 = vmatprep.subr.bf16.mxu1 %v4734_v22  ;;  %v4860_v14 = vld [vmem:[#allocation8 + $0x20] sm:$0xff]   ;;  %v4861_v22 = vld [vmem:[#allocation8 + $0x68] sm:$0xff]  }
 0x162   :  { %2730 = vmatpush1.bf16.msra.mxu0 %v4729_v29  ;;  %2894 = vmatpush1.bf16.msra.mxu1 %v4732_v43  ;;  %v1075_v29 = vsub.s32 0, %v5464_v63  ;;  %v5467_v43 = vld [vmem:[#allocation10] ss:$8 sm:$0xf] }
 0x163   :  { %2731 = vmatprep.subr.bf16.mxu0 %v4737_v33  ;;  %2895 = vmatprep.subr.bf16.mxu1 %v4740_v28  ;;  %v1087_v33 = vsub.s32 3, %v5464_v63  ;;  %v1080_v34 = vrot.slane %v5467_v43, %v1079_v30 }
 0x164   :  { %v1076_v28 = vrot.slane %v5467_v43, %v1075_v29 }
 0x165   :  { %v1088_v26 = vrot.slane %v5467_v43, %v1087_v33  ;;  %v5044_v33 = vmov 0.0  }
 0x166   :  { %2732 = vmatpush1.bf16.msra.mxu0 %v4735_v27  ;;  %2896 = vmatpush1.bf16.msra.mxu1 %v4738_v35 }
 0x167   :  { %2733 = vmatprep.subr.bf16.mxu0 %v4743_v38  ;;  %2897 = vmatprep.subr.bf16.mxu1 %v4746_v39 }
 0x16a   :  { %2734 = vmatpush1.bf16.msra.mxu0 %v4741_v40  ;;  %2898 = vmatpush1.bf16.msra.mxu1 %v4744_v47 }
 0x16b   :  { %3311 = vmatprep.subr.bf16.mxu0 %v4757_v9  ;;  %4180 = vmatprep.subr.bf16.mxu1 %v4851_v25  ;;  %v4844_v25 = vld [vmem:[#allocation7 + $0x1d4] ss:$8 sps:$4 sm:$0xff]  }
 0x16d   :  { %2736 = vmatmul.mubr.bf16.vlgmr.msra.gmra.mrb[0].mxu0 %v1290_v41  ;;  %2900 = vmatmul.mubr.bf16.vlgmr.msra.gmra.mrb[0].mxu1 %v1290_v41 }
 0x16e   :  { %3312 = vmatpush1.bf16.msra.mxu0 %v4755_v50  ;;  %4181 = vmatpush3.bf16.msra.mxu1 %v4852_v17  ;;  %v4842_v17 = vld [vmem:[#allocation7 + $0x1d0] ss:$8 sps:$4 sm:$0xff]  }
 0x16f   :  { %3313 = vmatprep.subr.bf16.mxu0 %v4760_v42  ;;  %4182 = vmatprep.subr.bf16.mxu1 %v4853_v18 }
 0x172   :  { %3314 = vmatpush1.bf16.msra.mxu0 %v4758_v55  ;;  %4183 = vmatpush3.bf16.msra.mxu1 %v4854_v20  ;;  %v4847_v20 = vld [vmem:[#allocation7 + $0x1e4] ss:$8 sps:$4 sm:$0xff]  }
 0x173   :  { %3315 = vmatprep.subr.bf16.mxu0 %v4763_v36  ;;  %4184 = vmatprep.subr.bf16.mxu1 %v4855_v57  ;;  %v4845_v57 = vld [vmem:[#allocation7 + $0x1e0] ss:$8 sps:$4 sm:$0xff]  }
 0x176   :  { %3316 = vmatpush1.bf16.msra.mxu0 %v4761_v62  ;;  %4185 = vmatpush3.bf16.msra.mxu1 %v4856_v21  ;;  %v4803_v62 = vld [vmem:[#allocation7 + $0x100] ss:$8 sps:$4 sm:$0xff]  }
 0x177   :  { %3317 = vmatprep.subr.bf16.mxu0 %v4766_v51  ;;  %4186 = vmatprep.subr.bf16.mxu1 %v4857_v58  ;;  %v4850_v58 = vld [vmem:[#allocation7 + $0x1f4] ss:$8 sps:$4 sm:$0xff]  }
 0x17a   :  { %3318 = vmatpush1.bf16.msra.mxu0 %v4764_v46  ;;  %4187 = vmatpush3.bf16.msra.mxu1 %v4858_v49  ;;  %v4808_v46 = vld [vmem:[#allocation7 + $0x114] ss:$8 sps:$4 sm:$0xff]   ;;  %v4848_v49 = vld [vmem:[#allocation7 + $0x1f0] ss:$8 sps:$4 sm:$0xff]  }
 0x17b   :  { %3319 = vmatprep.subr.bf16.mxu0 %v4769_v15  ;;  %4188 = vmatprep.subr.bf16.mxu1 %v4859_v8 }
 0x17e   :  { %3320 = vmatpush1.bf16.msra.mxu0 %v4767_v54  ;;  %4189 = vmatpush3.bf16.msra.mxu1 %v4860_v14  ;;  %v4806_v54 = vld [vmem:[#allocation7 + $0x110] ss:$8 sps:$4 sm:$0xff]  }
 0x17f   :  { %3321 = vmatprep.subr.bf16.mxu0 %v4772_v59  ;;  %4190 = vmatprep.subr.bf16.mxu1 %v4861_v22  ;;  %v4811_v59 = vld [vmem:[#allocation7 + $0x124] ss:$8 sps:$4 sm:$0xff]   ;;  %v4863_v22 = vld [vmem:[#allocation8 + $0x70] sm:$0xff]  }
 0x182   :  { %3322 = vmatpush1.bf16.msra.mxu0 %v4770_v60  ;;  %4191 = vmatpush3.bf16.msra.mxu1 %v4862_v23  ;;  %v4809_v60 = vld [vmem:[#allocation7 + $0x120] ss:$8 sps:$4 sm:$0xff]   ;;  %v4864_v23 = vld [vmem:[#allocation8 + $0x30] sm:$0xff]  }
 0x183   :  { %3323 = vmatprep.subr.bf16.mxu0 %v4775_v61  ;;  %v4814_v61 = vld [vmem:[#allocation7 + $0x134] ss:$8 sps:$4 sm:$0xff]   ;;  %4192 = vmatprep.subr.bf16.mxu1 %v4863_v22 }
 0x186   :  { %3324 = vmatpush1.bf16.msra.mxu0 %v4773_v44  ;;  %v4812_v44 = vld [vmem:[#allocation7 + $0x130] ss:$8 sps:$4 sm:$0xff]   ;;  %4193 = vmatpush3.bf16.msra.mxu1 %v4864_v23 }
 0x187   :  { %3325 = vmatprep.subr.bf16.mxu0 %v4778_v45  ;;  %v4817_v45 = vld [vmem:[#allocation7 + $0x144] ss:$8 sps:$4 sm:$0xff]   ;;  %4194 = vmatprep.subr.bf16.mxu1 %v4865_v24 }
 0x188   :  { %v735_v24 = vld [vmem:[#allocation10 + $0x5] ss:$0 sm:$0xff] }
 0x18a   :  { %3326 = vmatpush1.bf16.msra.mxu0 %v4776_v31  ;;  %v4815_v31 = vld [vmem:[#allocation7 + $0x140] ss:$8 sps:$4 sm:$0xff]  }
 0x18b   :  { %3327 = vmatprep.subr.bf16.mxu0 %v4781_v0  ;;  %v4820_v0 = vld [vmem:[#allocation7 + $0x154] ss:$8 sps:$4 sm:$0xff]  }
 0x18e   :  { %3328 = vmatpush1.bf16.msra.mxu0 %v4779_v1  ;;  %v4818_v1 = vld [vmem:[#allocation7 + $0x150] ss:$8 sps:$4 sm:$0xff]  }
 0x18f   :  { %3329 = vmatprep.subr.bf16.mxu0 %v4784_v2  ;;  %v4823_v2 = vld [vmem:[#allocation7 + $0x164] ss:$8 sps:$4 sm:$0xff]  }
 0x192   :  { %3330 = vmatpush1.bf16.msra.mxu0 %v4782_v12  ;;  %v4821_v12 = vld [vmem:[#allocation7 + $0x160] ss:$8 sps:$4 sm:$0xff]  }
 0x193   :  { %3331 = vmatprep.subr.bf16.mxu0 %v4787_v19  ;;  %v4826_v19 = vld [vmem:[#allocation7 + $0x174] ss:$8 sps:$4 sm:$0xff]  }
 0x196   :  { %3332 = vmatpush1.bf16.msra.mxu0 %v4785_v3  ;;  %v4824_v3 = vld [vmem:[#allocation7 + $0x170] ss:$8 sps:$4 sm:$0xff]  }
 0x197   :  { %3333 = vmatprep.subr.bf16.mxu0 %v4790_v53  ;;  %v4829_v53 = vld [vmem:[#allocation7 + $0x184] ss:$8 sps:$4 sm:$0xff]  }
 0x19a   :  { %3334 = vmatpush1.bf16.msra.mxu0 %v4788_v4  ;;  %v4827_v4 = vld [vmem:[#allocation7 + $0x180] ss:$8 sps:$4 sm:$0xff]  }
 0x19b   :  { %3335 = vmatprep.subr.bf16.mxu0 %v4793_v5  ;;  %v4832_v5 = vld [vmem:[#allocation7 + $0x194] ss:$8 sps:$4 sm:$0xff]  }
 0x19e   :  { %3336 = vmatpush1.bf16.msra.mxu0 %v4791_v56  ;;  %v4830_v56 = vld [vmem:[#allocation7 + $0x190] ss:$8 sps:$4 sm:$0xff]  }
 0x19f   :  { %3337 = vmatprep.subr.bf16.mxu0 %v4796_v6  ;;  %v4835_v6 = vld [vmem:[#allocation7 + $0x1a4] ss:$8 sps:$4 sm:$0xff]  }
 0x1a2   :  { %3338 = vmatpush1.bf16.msra.mxu0 %v4794_v32  ;;  %v4833_v32 = vld [vmem:[#allocation7 + $0x1a0] ss:$8 sps:$4 sm:$0xff]  }
 0x1a3   :  { %3339 = vmatprep.subr.bf16.mxu0 %v4799_v7  ;;  %v4838_v7 = vld [vmem:[#allocation7 + $0x1b4] ss:$8 sps:$4 sm:$0xff]  }
 0x1a6   :  { %3340 = vmatpush1.bf16.msra.mxu0 %v4797_v10  ;;  %v4836_v10 = vld [vmem:[#allocation7 + $0x1b0] ss:$8 sps:$4 sm:$0xff]  }
 0x1a7   :  { %3341 = vmatprep.subr.bf16.mxu0 %v4802_v48  ;;  %v4841_v48 = vld [vmem:[#allocation7 + $0x1c4] ss:$8 sps:$4 sm:$0xff]  }
 0x1aa   :  { %3342 = vmatpush1.bf16.msra.mxu0 %v4800_v11  ;;  %v4839_v11 = vld [vmem:[#allocation7 + $0x1c0] ss:$8 sps:$4 sm:$0xff]  }
 0x1ab   :  { %3352 = vmatprep.subr.bf16.mxu0 %v4805_v16  ;;  %v1083_v16 = vsub.s32 2, %v5464_v63  ;;  %v4869_v63 = vld [vmem:[#allocation8 + $0x90] sm:$0xff]  }
 0x1ad   :  { %v1084_v18 = vrot.slane %v5467_v43, %v1083_v16  ;;  %v4866_v43 = vld [vmem:[#allocation8 + $0x38] sm:$0xff]   ;;  %v4885_v16 = vld [vmem:[#allocation8 + $0x110] sm:$0xff]  }
 0x1ae   :  { %4195 = vmatpush3.bf16.msra.mxu1 %v4866_v43 }
 0x1af   :  { %4229 = vmatprep.subr.bf16.mxu1 %v5044_v33 }
 0x240   :  { %v2737_v27 = vpop.f32.mrb[0].mxu0  ;;  %v5478_v35 = vpop.f32.mrb[0].mxu1 }
 0x241   :  { %v4289_v37 = vadd.f32 %v2737_v27, %v1076_v28  ;;  %v2739_v38 = vpop.f32.mrb[1].mxu0  ;;  %v2903_v39 = vpop.f32.mrb[1].mxu1  ;;  %v4291_v21 = vadd.f32 %v5478_v35, %v1084_v18  ;;  %v731_v28 = vld [vmem:[#allocation10 + $0x1] ss:$8 sm:$0x3] }
 0x242   :  { %v4290_v13 = vadd.f32 %v2739_v38, %v1080_v34  ;;  %v4292_v40 = vadd.f32 %v2903_v39, %v1088_v26  ;;  %v2741_v47 = vpop.f32.mrb[2].mxu0  ;;  %v2905_v52 = vpop.f32.mrb[2].mxu1  ;;  %v2984_v34 = vrot.slane %v731_v28, %v1075_v29  ;;  %v2988_v26 = vrot.slane %v731_v28, %v1079_v30  ;;  %v4870_v29 = vld [vmem:[#allocation8 + $0x98] sm:$0xff]   ;;  %v4871_v30 = vld [vmem:[#allocation8 + $0xa0] sm:$0xff]   ;;  %v4888_v18 = vld [vmem:[#allocation8 + $0x128] sm:$0xff]  }
 0x243   :  { %v2908_v9 = vmax.f32 %v4289_v37, 0.0  ;;  %v2742_v41 = vpop.f32.mrb[3].mxu0  ;;  %v2906_v50 = vpop.f32.mrb[3].mxu1  ;;  %v2910_v8 = vmax.f32 %v4291_v21, 0.0  ;;  %v734_v21 = vld [vmem:[#allocation10 + $0x4] ss:$0 sm:$0xff] }
 0x244   :  { %v2909_v42 = vmax.f32 %v4290_v13, 0.0  ;;  %v2911_v55 = vmax.f32 %v4292_v40, 0.0  ;;  %v4868_v50 = vld [vmem:[#allocation8 + $0x88] sm:$0xff]  }
 0x245   :  { %v2912_v51 = vpack.c.bf16 %v2908_v9, %v2908_v9  ;;  %v2914_v14 = vpack.c.bf16 %v2910_v8, %v2910_v8  ;;  %v4867_v9 = vld [vmem:[#allocation8 + $0x80] sm:$0xff]  }
 0x246   :  { %v2913_v36 = vpack.c.bf16 %v2909_v42, %v2909_v42  ;;  %v2915_v15 = vpack.c.bf16 %v2911_v55, %v2911_v55  ;;  %v4872_v42 = vld [vmem:[#allocation8 + $0xa8] sm:$0xff]   ;;  %v4873_v55 = vld [vmem:[#allocation8 + $0xb0] sm:$0xff]  }
 0x248   :  { %3343 = vmatprep.mubr.bf16.mxu0 %v2913_v36  ;;  %v4874_v36 = vld [vmem:[#allocation8 + $0xb8] sm:$0xff]  }
 0x249   :  { %3344 = vmatmul.mubr.bf16.vlgmr.msra.gmra.mrb[4].mxu0 %v2912_v51  ;;  %v732_v51 = vld [vmem:[#allocation10 + $0x2] ss:$0 sm:$0xff] }
 0x24a   :  { %3353 = vmatpush1.bf16.msra.mxu0 %v4803_v62  ;;  %3384 = vmatprep.mubr.bf16.mxu0 %v2915_v15 }
 0x24b   :  { %3354 = vmatprep.subr.bf16.mxu0 %v4808_v46 }
 0x24e   :  { %3355 = vmatpush1.bf16.msra.mxu0 %v4806_v54 }
 0x24f   :  { %3356 = vmatprep.subr.bf16.mxu0 %v4811_v59 }
 0x252   :  { %3357 = vmatpush1.bf16.msra.mxu0 %v4809_v60 }
 0x253   :  { %3358 = vmatprep.subr.bf16.mxu0 %v4814_v61 }
 0x256   :  { %3359 = vmatpush1.bf16.msra.mxu0 %v4812_v44  ;;  %v4875_v44 = vld [vmem:[#allocation8 + $0xc0] sm:$0xff]  }
 0x257   :  { %3360 = vmatprep.subr.bf16.mxu0 %v4817_v45 }
 0x25a   :  { %3361 = vmatpush1.bf16.msra.mxu0 %v4815_v31  ;;  %v4876_v31 = vld [vmem:[#allocation8 + $0xc8] sm:$0xff]  }
 0x25b   :  { %3362 = vmatprep.subr.bf16.mxu0 %v4820_v0  ;;  %v4877_v0 = vld [vmem:[#allocation8 + $0xd0] sm:$0xff]  }
 0x25e   :  { %3363 = vmatpush1.bf16.msra.mxu0 %v4818_v1  ;;  %v4878_v1 = vld [vmem:[#allocation8 + $0xd8] sm:$0xff]  }
 0x25f   :  { %3364 = vmatprep.subr.bf16.mxu0 %v4823_v2  ;;  %v4879_v2 = vld [vmem:[#allocation8 + $0xe0] sm:$0xff]  }
 0x262   :  { %3365 = vmatpush1.bf16.msra.mxu0 %v4821_v12  ;;  %v4880_v12 = vld [vmem:[#allocation8 + $0xe8] sm:$0xff]  }
 0x263   :  { %3366 = vmatprep.subr.bf16.mxu0 %v4826_v19  ;;  %v4881_v19 = vld [vmem:[#allocation8 + $0xf0] sm:$0xff]  }
 0x266   :  { %3367 = vmatpush1.bf16.msra.mxu0 %v4824_v3  ;;  %v4882_v3 = vld [vmem:[#allocation8 + $0xf8] sm:$0xff]  }
 0x267   :  { %3368 = vmatprep.subr.bf16.mxu0 %v4829_v53  ;;  %v733_v53 = vld [vmem:[#allocation10 + $0x3] ss:$0 sm:$0xff] }
 0x26a   :  { %3369 = vmatpush1.bf16.msra.mxu0 %v4827_v4 }
 0x26b   :  { %3370 = vmatprep.subr.bf16.mxu0 %v4832_v5 }
 0x26e   :  { %3371 = vmatpush1.bf16.msra.mxu0 %v4830_v56 }
 0x26f   :  { %3372 = vmatprep.subr.bf16.mxu0 %v4835_v6 }
 0x272   :  { %3373 = vmatpush1.bf16.msra.mxu0 %v4833_v32 }
 0x273   :  { %3374 = vmatprep.subr.bf16.mxu0 %v4838_v7 }
 0x276   :  { %3375 = vmatpush1.bf16.msra.mxu0 %v4836_v10  ;;  %v4883_v10 = vld [vmem:[#allocation8 + $0x100] sm:$0xff]  }
 0x277   :  { %3376 = vmatprep.subr.bf16.mxu0 %v4841_v48 }
 0x27a   :  { %3377 = vmatpush1.bf16.msra.mxu0 %v4839_v11  ;;  %v4884_v11 = vld [vmem:[#allocation8 + $0x108] sm:$0xff]  }
 0x27b   :  { %3378 = vmatprep.subr.bf16.mxu0 %v4844_v25  ;;  %v4886_v25 = vld [vmem:[#allocation8 + $0x118] sm:$0xff]  }
 0x27e   :  { %3379 = vmatpush1.bf16.msra.mxu0 %v4842_v17  ;;  %v4887_v17 = vld [vmem:[#allocation8 + $0x120] sm:$0xff]  }
 0x27f   :  { %3380 = vmatprep.subr.bf16.mxu0 %v4847_v20  ;;  %v4889_v20 = vld [vmem:[#allocation8 + $0x130] sm:$0xff]  }
 0x282   :  { %3381 = vmatpush1.bf16.msra.mxu0 %v4845_v57  ;;  %v4890_v57 = vld [vmem:[#allocation8 + $0x138] sm:$0xff]  }
 0x283   :  { %3382 = vmatprep.subr.bf16.mxu0 %v4850_v58 }
 0x286   :  { %3383 = vmatpush1.bf16.msra.mxu0 %v4848_v49 }
 0x289   :  { %3385 = vmatmul.mubr.bf16.vlgmr.msra.gmra.mrb[4].mxu0 %v2914_v14 }
 0x35c   :  { %v3386_v27 = vpop.f32.mrb[4].mxu0 }
 0x35d   :  { %v4293_v35 = vadd.f32 %v3386_v27, %v2984_v34  ;;  %v3388_v37 = vpop.f32.mrb[5].mxu0 }
 0x35e   :  { %v4294_v38 = vadd.f32 %v3388_v37, %v2988_v26  ;;  %v3390_v39 = vpop.f32.mrb[6].mxu0 }
 0x35f   :  { %v3393_v13 = vmax.f32 %v4293_v35, 0.0  ;;  %v3391_v40 = vpop.f32.mrb[7].mxu0 }
 0x360   :  { %v3394_v47 = vmax.f32 %v4294_v38, 0.0 }
 0x361   :  { %v3395_v41 = vpack.c.bf16 %v3393_v13, %v3393_v13 }
 0x362   :  { %v3396_v52 = vpack.c.bf16 %v3394_v47, %v3394_v47 }
 0x364   :  { %3525 = vmatprep.mubr.bf16.mxu1 %v3396_v52 }
 0x365   :  { %3526 = vmatmul.mubr.bf16.vlgmr.msra.gmra.mrb[4].mxu1 %v3395_v41 }
 0x366   :  { %4230 = vmatpush3.bf16.msra.mxu1 %v4867_v9  ;;  %4245 = vmatprep.mubr.msk.bf16.mxu1 %vm5045_vm8, %v5044_v33 }
 0x367   :  { %4231 = vmatprep.subr.bf16.mxu1 %v5044_v33 }
 0x36a   :  { %4232 = vmatpush3.bf16.msra.mxu1 %v4868_v50 }
 0x36b   :  { %4233 = vmatprep.subr.bf16.mxu1 %v5044_v33 }
 0x36e   :  { %4234 = vmatpush3.bf16.msra.mxu1 %v4869_v63 }
 0x36f   :  { %4235 = vmatprep.subr.bf16.mxu1 %v5044_v33 }
 0x372   :  { %4236 = vmatpush3.bf16.msra.mxu1 %v4870_v29 }
 0x373   :  { %4237 = vmatprep.subr.bf16.mxu1 %v5044_v33 }
 0x376   :  { %4238 = vmatpush3.bf16.msra.mxu1 %v4871_v30 }
 0x377   :  { %4239 = vmatprep.subr.bf16.mxu1 %v5044_v33 }
 0x37a   :  { %4240 = vmatpush3.bf16.msra.mxu1 %v4872_v42 }
 0x37b   :  { %4241 = vmatprep.subr.bf16.mxu1 %v5044_v33 }
 0x37e   :  { %4242 = vmatpush3.bf16.msra.mxu1 %v4873_v55 }
 0x37f   :  { %4243 = vmatprep.subr.bf16.mxu1 %v5044_v33 }
 0x382   :  { %4244 = vmatpush3.bf16.msra.mxu1 %v4874_v36 }
 0x383   :  { %4249 = vmatprep.subr.bf16.mxu1 %v5044_v33 }
 0x438   :  { %v4196_v62 = vpop.f32.mrb[4].mxu1 }
 0x439   :  { %v4197_v46 = vpop.f32.mrb[5].mxu1 }
 0x43a   :  { %v4198_v15 = vadd.f32 %v4197_v46, %v4196_v62  ;;  %v4199_v54 = vpop.f32.mrb[6].mxu1 }
 0x43b   :  { %v4200_v59 = vpop.f32.mrb[7].mxu1 }
 0x43c   :  { %v3528_v60 = vadd.f32 %v4198_v15, %v732_v51 }
 0x43e   :  { %v3533_v61 = vmax.f32 %v3528_v60, 0.0 }
 0x440   :  { %v3534_v45 = vpack.c.bf16 %v3533_v61, %v3533_v61 }
 0x442   :  { %4246 = vmatmul.mubr.bf16.vlgmr.msra.gmra.mrb[8].mxu1 %v3534_v45 }
 0x443   :  { %4250 = vmatpush3.bf16.msra.mxu1 %v4875_v44  ;;  %4265 = vmatprep.mubr.msk.bf16.mxu1 %vm5045_vm8, %v5044_v33 }
 0x444   :  { %4251 = vmatprep.subr.bf16.mxu1 %v5044_v33 }
 0x447   :  { %4252 = vmatpush3.bf16.msra.mxu1 %v4876_v31 }
 0x448   :  { %4253 = vmatprep.subr.bf16.mxu1 %v5044_v33 }
 0x44b   :  { %4254 = vmatpush3.bf16.msra.mxu1 %v4877_v0 }
 0x44c   :  { %4255 = vmatprep.subr.bf16.mxu1 %v5044_v33 }
 0x44f   :  { %4256 = vmatpush3.bf16.msra.mxu1 %v4878_v1 }
 0x450   :  { %4257 = vmatprep.subr.bf16.mxu1 %v5044_v33 }
 0x453   :  { %4258 = vmatpush3.bf16.msra.mxu1 %v4879_v2 }
 0x454   :  { %4259 = vmatprep.subr.bf16.mxu1 %v5044_v33 }
 0x457   :  { %4260 = vmatpush3.bf16.msra.mxu1 %v4880_v12 }
 0x458   :  { %4261 = vmatprep.subr.bf16.mxu1 %v5044_v33 }
 0x45b   :  { %4262 = vmatpush3.bf16.msra.mxu1 %v4881_v19 }
 0x45c   :  { %4263 = vmatprep.subr.bf16.mxu1 %v5044_v33 }
 0x45f   :  { %4264 = vmatpush3.bf16.msra.mxu1 %v4882_v3 }
 0x460   :  { %4269 = vmatprep.subr.bf16.mxu1 %v5044_v33 }
 0x515   :  { %v3617_v4 = vpop.f32.mrb[8].mxu1 }
 0x516   :  { %v3618_v5 = vadd.f32 %v3617_v4, %v733_v53  ;;  %v4247_v56 = vpop.f32.mrb[9].mxu1 }
 0x517   :  { %v3620_v6 = vpop.f32.mrb[10].mxu1 }
 0x518   :  { %v3623_v32 = vmax.f32 %v3618_v5, 0.0  ;;  %v4248_v7 = vpop.f32.mrb[11].mxu1 }
 0x51a   :  { %v3624_v48 = vpack.c.bf16 %v3623_v32, %v3623_v32 }
 0x51c   :  { %4266 = vmatmul.mubr.bf16.vlgmr.msra.gmra.mrb[12].mxu1 %v3624_v48 }
 0x51d   :  { %4270 = vmatpush3.bf16.msra.mxu1 %v4883_v10  ;;  %4285 = vmatprep.mubr.msk.bf16.mxu1 %vm5045_vm8, %v5044_v33 }
 0x51e   :  { %4271 = vmatprep.subr.bf16.mxu1 %v5044_v33 }
 0x521   :  { %4272 = vmatpush3.bf16.msra.mxu1 %v4884_v11 }
 0x522   :  { %4273 = vmatprep.subr.bf16.mxu1 %v5044_v33 }
 0x525   :  { %4274 = vmatpush3.bf16.msra.mxu1 %v4885_v16 }
 0x526   :  { %4275 = vmatprep.subr.bf16.mxu1 %v5044_v33 }
 0x529   :  { %4276 = vmatpush3.bf16.msra.mxu1 %v4886_v25 }
 0x52a   :  { %4277 = vmatprep.subr.bf16.mxu1 %v5044_v33 }
 0x52d   :  { %4278 = vmatpush3.bf16.msra.mxu1 %v4887_v17 }
 0x52e   :  { %4279 = vmatprep.subr.bf16.mxu1 %v5044_v33 }
 0x531   :  { %4280 = vmatpush3.bf16.msra.mxu1 %v4888_v18 }
 0x532   :  { %4281 = vmatprep.subr.bf16.mxu1 %v5044_v33 }
 0x535   :  { %4282 = vmatpush3.bf16.msra.mxu1 %v4889_v20 }
 0x536   :  { %4283 = vmatprep.subr.bf16.mxu1 %v5044_v33 }
 0x539   :  { %4284 = vmatpush3.bf16.msra.mxu1 %v4890_v57 }
 0x5ef   :  { %v3707_v58 = vpop.f32.mrb[12].mxu1 }
 0x5f0   :  { %v3708_v49 = vadd.f32 %v3707_v58, %v734_v21  ;;  %v4267_v8 = vpop.f32.mrb[13].mxu1 }
 0x5f1   :  { %v3710_v14 = vpop.f32.mrb[14].mxu1 }
 0x5f2   :  { %v3713_v22 = vpack.c.bf16 %v3708_v49, %v3708_v49  ;;  %v4268_v23 = vpop.f32.mrb[15].mxu1 }
 0x5f4   :  { %4286 = vmatmul.mubr.bf16.vlgmr.msra.gmra.mrb[16].mxu1 %v3713_v22 }
 0x6c7   :  { %v3796_v43 = vpop.f32.mrb[16].mxu1 }
 0x6c8   :  { %v3797_v28 = vadd.f32 %v3796_v43, %v735_v24  ;;  %v4287_v34 = vpop.f32.mrb[17].mxu1 }
 0x6c9   :  { %v3799_v26 = vpop.f32.mrb[18].mxu1 }
 0x6ca   :  { %3802 = vst [vmem:[#allocation11] sm:$0xff] %v3797_v28  ;;  %v4288_v33 = vpop.f32.mrb[19].mxu1 }
 0x6cb   :  { %5012 = shalt.err (!%p5009_p2)
}
 0x6cc   :  { %s5013_s9 = scalar_lea.hbm %s5534_s5, 128 }
 0x6cd   :  { %p5014_p3 = scmp.ne.s32.totalorder %s5534_s5, %s5013_s9  ;;  %p5017_p4 = scmp.lt.u32.totalorder %s5013_s9, %s5534_s5 }
 0x6cf   :  { %p5019_p5 = pnand %p5017_p4, %p5014_p3 }
 0x6d1   :  { %5022 = shalt.err (!%p5019_p5)
}
 0x6d2   :  { %3812 = dma.vmem_to_hbm [thread:$0]  %s3810_s30, 128, %s5534_s5, [#allocation4]  }
 0x6d3   :  { %5029 = dma.done.wait [#allocation4], 128  }
 0x6d4   :  { %5030 = vsyncadd [#allocation4], 4294967168 }
 0x6d5   :  { %3816 = vsyncpa [#allocation3], 1 }
 0x6d6   :  { %3817 = vsyncpa [#allocation6], 1 }
 0x6d7   :  { %3818 = vsyncpa [#allocation9], 1 }
 0x6d8   :  { %3819 = vsyncpa [#allocation4], 1 }

</bundles_post_ra>
